<compile_context>
chip_gen: v5e
topology: v5e:2x2
jax: 0.10.0
libtpu: 0.0.40
codegen_flags: <defaults>
</compile_context>

<pallas_src>
import functools

import jax
import jax.numpy as jnp
from jax import lax
from jax.experimental import pallas as pl
from jax.experimental.pallas import tpu as pltpu

# Fits v7x's 64 MiB per-TC VMEM with headroom; far below v5e/v6e's 128 MiB.
_VMEM_LIMIT_BYTES = 32 * 1024 * 1024


def _round_up(x, m):
    return ((x + m - 1) // m) * m


def _layernorm(x, gamma, beta, eps=1e-5):
    mu = jnp.mean(x, axis=-1, keepdims=True)
    var = jnp.mean((x - mu) ** 2, axis=-1, keepdims=True)
    return (x - mu) * lax.rsqrt(var + eps) * gamma + beta


def _gelu_exact(x):
    # PyTorch nn.GELU default (erf form)
    return 0.5 * x * (1.0 + lax.erf(x / jnp.sqrt(2.0).astype(x.dtype)))


# ---------------------------------------------------------------------------
# Pass 1: LayerNorm1 + QKV projection (large row tiles, bf16 weight resident,
#         bf16 output to halve inter-pass HBM traffic)
# ---------------------------------------------------------------------------
def _ln_qkv_kernel(x_ref, g1_ref, b1_ref, wqkv_ref, qkv_ref):
    x = x_ref[...].astype(jnp.float32)                     # (blk_rows, in_dim)
    xn = _layernorm(x, g1_ref[0], b1_ref[0])
    y = jnp.dot(xn.astype(jnp.bfloat16), wqkv_ref[...],
                preferred_element_type=jnp.float32)
    qkv_ref[...] = y.astype(qkv_ref.dtype)                 # bf16 store


# ---------------------------------------------------------------------------
# Pass 2: flash attention (online softmax over kv tiles) + proj/skip/LN2/MLP
# ---------------------------------------------------------------------------
def _attn_mlp_kernel(q_ref, k_ref, v_ref, vskip_ref,
                     wproj_ref, bproj_ref, g2_ref, b2_ref,
                     w1_ref, bf1_ref, w2_ref, bf2_ref,
                     o_ref,
                     m_sc, l_sc, acc_sc,
                     *, n_valid, block_kv, masked):
    ki = pl.program_id(2)

    @pl.when(ki == 0)
    def _init():
        m_sc[...] = jnp.full(m_sc.shape, -jnp.inf, jnp.float32)
        l_sc[...] = jnp.zeros(l_sc.shape, jnp.float32)
        acc_sc[...] = jnp.zeros(acc_sc.shape, jnp.float32)

    # q/k/v blocks are head-major (H, blk, dh), bf16.  The softmax scale is
    # already folded into q (via W_qkv), so no per-score VPU multiply here.
    q = q_ref[...]
    k = k_ref[...]
    s = jnp.einsum("hqd,hkd->hqk", q, k,
                   preferred_element_type=jnp.float32)     # (H, blk_q, blk_kv)

    if masked:  # static Python check: only traced when N was padded
        # Cheap (1, 1, blk_kv) iota bias broadcast into the add; no
        # full-score-shape iota / compare / select.
        key_idx = ki * block_kv + lax.broadcasted_iota(jnp.int32, (1, 1, block_kv), 2)
        s = s + jnp.where(key_idx < n_valid, 0.0, -1e30).astype(jnp.float32)

    m_prev = m_sc[...]
    m_new = jnp.maximum(m_prev, jnp.max(s, axis=-1, keepdims=True))
    alpha = jnp.exp(m_prev - m_new)
    p = jnp.exp(s - m_new)
    l_sc[...] = alpha * l_sc[...] + jnp.sum(p, axis=-1, keepdims=True)
    acc_sc[...] = alpha * acc_sc[...] + jnp.einsum(
        "hqk,hkd->hqd", p.astype(v_ref.dtype), v_ref[...],
        preferred_element_type=jnp.float32)
    m_sc[...] = m_new

    @pl.when(ki == pl.num_programs(2) - 1)
    def _finalize():
        inv_l = pl.reciprocal(l_sc[...], approx=True)      # EUP slot, ~free
        attn = (acc_sc[...] * inv_l).astype(jnp.bfloat16)  # (H, blk_q, dh)

        # Out-projection: single batched dot_general over heads, then a cheap
        # sum over the (small, major) head axis -- no per-head loop, no
        # lane-unaligned concat / transpose.
        proj = lax.dot_general(
            attn, wproj_ref[...],
            dimension_numbers=(((2,), (1,)), ((0,), (0,))),
            preferred_element_type=jnp.float32)            # (H, blk_q, out_dim)
        proj = jnp.sum(proj, axis=0) + bproj_ref[0]

        x1 = vskip_ref[...].astype(jnp.float32) + proj     # use_skip=True
        x1n = _layernorm(x1, g2_ref[0], b2_ref[0])
        h1 = jnp.dot(x1n.astype(jnp.bfloat16), w1_ref[...],
                     preferred_element_type=jnp.float32) + bf1_ref[0]
        h1 = _gelu_exact(h1)
        h2 = jnp.dot(h1.astype(jnp.bfloat16), w2_ref[...],
                     preferred_element_type=jnp.float32) + bf2_ref[0]
        o_ref[...] = (x1 + h2).astype(o_ref.dtype)


# ---------------------------------------------------------------------------
# Wrapper
# ---------------------------------------------------------------------------
def token_transformer(x, params, *, num_heads, block_q=256, block_kv=512,
                      block_rows=512):
    B, N, in_dim = x.shape
    out_dim = params["wproj"].shape[0]
    hidden = params["w1"].shape[1]
    assert out_dim % num_heads == 0
    dh = out_dim // num_heads
    scale = (in_dim // num_heads) ** (-0.5)   # PyTorch module quirk

    # Decoupled q / kv tile sizes; blk_kv is a multiple of blk_q so a single
    # padded length Np works for both axes.
    blk_q = max(8, min(_round_up(block_q, 8), _round_up(N, 8)))
    blk_kv = max(blk_q, min(_round_up(block_kv, 8), _round_up(N, 8)))
    blk_kv = _round_up(blk_kv, blk_q)
    Np = _round_up(N, blk_kv)
    masked = Np != N

    # Pass-1 row tile: as large as possible (memory-bound pass), dividing Np.
    if Np <= block_rows:
        blk_rows = Np
    else:
        blk_rows = blk_kv
        m = block_rows // blk_kv
        while m >= 1:
            cand = m * blk_kv
            if Np % cand == 0:
                blk_rows = cand
                break
            m -= 1

    x_p = jnp.pad(x, ((0, 0), (0, Np - N), (0, 0))) if masked else x

    # bf16 weights for the MXU (accumulation stays f32 inside the kernels).
    # Fold the softmax scale into the q columns of W_qkv (trace-time).
    wqkv = params["wqkv"].astype(jnp.float32)
    wqkv_scaled = jnp.concatenate([wqkv[:, :out_dim] * scale, wqkv[:, out_dim:]],
                                  axis=1)
    wqkv_bf = wqkv_scaled.astype(jnp.bfloat16)                              # (in_dim, 3*out_dim)
    wproj_hm = params["wproj"].reshape(num_heads, dh, out_dim).astype(jnp.bfloat16)
    w1_bf = params["w1"].astype(jnp.bfloat16)
    w2_bf = params["w2"].astype(jnp.bfloat16)

    # ---- pass 1: LN1 + qkv projection, tiled over rows, bf16 output -------
    qkv = pl.pallas_call(
        _ln_qkv_kernel,
        out_shape=jax.ShapeDtypeStruct((B, Np, 3 * out_dim), jnp.bfloat16),
        grid_spec=pltpu.PrefetchScalarGridSpec(
            num_scalar_prefetch=0,
            grid=(B, Np // blk_rows),
            in_specs=[
                pl.BlockSpec((None, blk_rows, in_dim), lambda b, i: (b, i, 0)),
                pl.BlockSpec((1, in_dim), lambda b, i: (0, 0)),
                pl.BlockSpec((1, in_dim), lambda b, i: (0, 0)),
                pl.BlockSpec((in_dim, 3 * out_dim), lambda b, i: (0, 0)),
            ],
            out_specs=pl.BlockSpec((None, blk_rows, 3 * out_dim),
                                   lambda b, i: (b, i, 0)),
        ),
        compiler_params=pltpu.CompilerParams(
            dimension_semantics=("parallel", "parallel"),
            vmem_limit_bytes=_VMEM_LIMIT_BYTES,
        ),
    )(x_p, params["g1"], params["b1"], wqkv_bf)

    # Head-major split of q/k/v (one bf16 XLA pass over qkv).  The v-skip term
    # is exactly the contiguous v-column slice of qkv -- no f32 transpose and
    # no extra f32 array is materialized.
    qkv_hm = qkv.reshape(B, Np, 3, num_heads, dh).transpose(2, 0, 3, 1, 4)  # (3,B,H,Np,dh) bf16
    q, k, v = qkv_hm[0], qkv_hm[1], qkv_hm[2]
    v_skip = qkv[..., 2 * out_dim:]                                         # (B, Np, out_dim) bf16

    kernel = functools.partial(
        _attn_mlp_kernel, n_valid=N, block_kv=blk_kv, masked=masked)

    out = pl.pallas_call(
        kernel,
        out_shape=jax.ShapeDtypeStruct((B, Np, out_dim), x.dtype),
        grid_spec=pltpu.PrefetchScalarGridSpec(
            num_scalar_prefetch=0,
            grid=(B, Np // blk_q, Np // blk_kv),
            in_specs=[
                pl.BlockSpec((None, num_heads, blk_q, dh), lambda b, qi, ki: (b, 0, qi, 0)),   # q
                pl.BlockSpec((None, num_heads, blk_kv, dh), lambda b, qi, ki: (b, 0, ki, 0)),  # k
                pl.BlockSpec((None, num_heads, blk_kv, dh), lambda b, qi, ki: (b, 0, ki, 0)),  # v
                pl.BlockSpec((None, blk_q, out_dim), lambda b, qi, ki: (b, qi, 0)),            # v skip
                pl.BlockSpec((num_heads, dh, out_dim), lambda b, qi, ki: (0, 0, 0)),           # W_proj
                pl.BlockSpec((1, out_dim), lambda b, qi, ki: (0, 0)),                          # b_proj
                pl.BlockSpec((1, out_dim), lambda b, qi, ki: (0, 0)),                          # ln2 gamma
                pl.BlockSpec((1, out_dim), lambda b, qi, ki: (0, 0)),                          # ln2 beta
                pl.BlockSpec((out_dim, hidden), lambda b, qi, ki: (0, 0)),                     # W_fc1
                pl.BlockSpec((1, hidden), lambda b, qi, ki: (0, 0)),                           # b_fc1
                pl.BlockSpec((hidden, out_dim), lambda b, qi, ki: (0, 0)),                     # W_fc2
                pl.BlockSpec((1, out_dim), lambda b, qi, ki: (0, 0)),                          # b_fc2
            ],
            out_specs=pl.BlockSpec((None, blk_q, out_dim), lambda b, qi, ki: (b, qi, 0)),
            scratch_shapes=[
                pltpu.VMEM((num_heads, blk_q, 1), jnp.float32),    # running max
                pltpu.VMEM((num_heads, blk_q, 1), jnp.float32),    # running denom
                pltpu.VMEM((num_heads, blk_q, dh), jnp.float32),   # output accumulator
            ],
        ),
        compiler_params=pltpu.CompilerParams(
            dimension_semantics=("parallel", "parallel", "arbitrary"),
            vmem_limit_bytes=_VMEM_LIMIT_BYTES,
        ),
    )(q, k, v, v_skip,
      wproj_hm, params["bproj"], params["g2"], params["b2"],
      w1_bf, params["bf1"], w2_bf, params["bf2"])

    return out[:, :N] if masked else out


# ---------------------------------------------------------------------------
# Pure-JAX reference (f32, mirrors the PyTorch forward exactly)
# ---------------------------------------------------------------------------
def reference_forward(x, params, *, num_heads):
    B, N, in_dim = x.shape
    out_dim = params["wproj"].shape[0]
    dh = out_dim // num_heads
    scale = (in_dim // num_heads) ** (-0.5)

    xn = _layernorm(x, params["g1"][0], params["b1"][0])
    qkv = xn @ params["wqkv"]                                  # (B, N, 3*out_dim)
    qkv = qkv.reshape(B, N, 3, num_heads, dh).transpose(2, 0, 3, 1, 4)
    q, k, v = qkv[0], qkv[1], qkv[2]                           # (B, H, N, dh)
    attn = (q * scale) @ jnp.swapaxes(k, -2, -1)
    attn = jax.nn.softmax(attn, axis=-1)
    o = (attn @ v).transpose(0, 2, 1, 3).reshape(B, N, out_dim)
    o = o @ params["wproj"] + params["bproj"][0]
    o = v.transpose(0, 2, 1, 3).reshape(B, N, out_dim) + o     # use_skip
    on = _layernorm(o, params["g2"][0], params["b2"][0])
    h = _gelu_exact(on @ params["w1"] + params["bf1"][0])
    h = h @ params["w2"] + params["bf2"][0]
    return o + h


def make_params(key, in_dim, out_dim, hidden):
    ks = jax.random.split(key, 4)
    std = 0.02
    return {
        "g1": jnp.ones((1, in_dim), jnp.float32),
        "b1": jnp.zeros((1, in_dim), jnp.float32),
        "wqkv": std * jax.random.normal(ks[0], (in_dim, 3 * out_dim), jnp.float32),
        "wproj": std * jax.random.normal(ks[1], (out_dim, out_dim), jnp.float32),
        "bproj": jnp.zeros((1, out_dim), jnp.float32),
        "g2": jnp.ones((1, out_dim), jnp.float32),
        "b2": jnp.zeros((1, out_dim), jnp.float32),
        "w1": std * jax.random.normal(ks[2], (out_dim, hidden), jnp.float32),
        "bf1": jnp.zeros((1, hidden), jnp.float32),
        "w2": std * jax.random.normal(ks[3], (hidden, out_dim), jnp.float32),
        "bf2": jnp.zeros((1, out_dim), jnp.float32),
    }


if __name__ == "__main__":
    key = jax.random.PRNGKey(0)

    # Small configs consistent with Token_transformer(in_dim, out_dim, num_heads).
    # Config 0 exercises multi-head + padded N + multiple q/kv tiles (online
    # softmax across kv tiles and the key-padding mask).  Config 1 is the
    # canonical T2T-style single-head setup.
    configs = [
        # (B, N,   in_dim, out_dim, num_heads, block_q, block_kv)
        (2, 200, 32, 64, 4, 64, 128),
        (2, 120, 64, 64, 1, 64, 64),
    ]

    for idx, (B, N, in_dim, out_dim, num_heads, bq, bkv) in enumerate(configs):
        hidden = int(out_dim * 1.0)   # mlp_ratio = 1.0
        kx, kp, key = jax.random.split(key, 3)
        x = jax.random.normal(kx, (B, N, in_dim), jnp.float32)
        params = make_params(kp, in_dim, out_dim, hidden)

        out = token_transformer(x, params, num_heads=num_heads,
                                block_q=bq, block_kv=bkv)
        out = jax.block_until_ready(out)

        ref = reference_forward(x, params, num_heads=num_heads)
        assert out.shape == (B, N, out_dim)
        max_err = float(jnp.max(jnp.abs(out - ref)))
        # bf16 MXU operands / bf16 qkv & v-skip intermediates (f32 accumulation)
        # vs a pure-f32 reference.
        assert jnp.allclose(out, ref, atol=2e-2, rtol=2e-2), \
            f"config {idx}: mismatch vs reference, max|err|={max_err}"

    print("KERNEL_OK")
</pallas_src>

<mosaic_0001>
module attributes {stable_mosaic.version = 11 : i64} {
  func.func @_ln_qkv_kernel(%arg0: i32, %arg1: i32, %arg2: memref<1x256x32xf32, #tpu.memory_space<vmem>>, %arg3: memref<1x32xf32, #tpu.memory_space<vmem>>, %arg4: memref<1x32xf32, #tpu.memory_space<vmem>>, %arg5: memref<32x192xbf16, #tpu.memory_space<vmem>>, %arg6: memref<1x256x192xbf16, #tpu.memory_space<vmem>>) attributes {dimension_semantics = [#tpu.dimension_semantics<parallel>, #tpu.dimension_semantics<parallel>], iteration_bounds = array<i64: 2, 1>, scalar_prefetch = 0 : i64, scratch_operands = 0 : i64, tpu.core_type = #tpu.core_type<tc>, window_params = [{transform_indices = @transform_0, window_bounds = array<i64: 1, 256, 32>}, {pipeline_mode = #tpu.pipeline_mode<synchronous>, transform_indices = @transform_1, window_bounds = array<i64: 1, 32>}, {pipeline_mode = #tpu.pipeline_mode<synchronous>, transform_indices = @transform_2, window_bounds = array<i64: 1, 32>}, {pipeline_mode = #tpu.pipeline_mode<synchronous>, transform_indices = @transform_3, window_bounds = array<i64: 32, 192>}, {transform_indices = @transform_4, window_bounds = array<i64: 1, 256, 192>}]} {
    %c0 = arith.constant 0 : index
    %c0_0 = arith.constant 0 : index
    %c0_1 = arith.constant 0 : index
    %0 = vector.load %arg2[%c0, %c0_0, %c0_1] : memref<1x256x32xf32, #tpu.memory_space<vmem>>, vector<1x256x32xf32>
    %1 = vector.shape_cast %0 : vector<1x256x32xf32> to vector<256x32xf32>
    %c0_2 = arith.constant 0 : index
    %c0_3 = arith.constant 0 : index
    %2 = vector.load %arg3[%c0_2, %c0_3] : memref<1x32xf32, #tpu.memory_space<vmem>>, vector<1x32xf32>
    %3 = vector.shape_cast %2 : vector<1x32xf32> to vector<32xf32>
    %c0_4 = arith.constant 0 : index
    %c0_5 = arith.constant 0 : index
    %4 = vector.load %arg4[%c0_4, %c0_5] : memref<1x32xf32, #tpu.memory_space<vmem>>, vector<1x32xf32>
    %5 = vector.shape_cast %4 : vector<1x32xf32> to vector<32xf32>
    %cst = arith.constant dense<0.000000e+00> : vector<256xf32>
    %6 = vector.multi_reduction <add>, %1, %cst [1] : vector<256x32xf32> to vector<256xf32>
    %7 = vector.shape_cast %6 : vector<256xf32> to vector<256x1xf32>
    %cst_6 = arith.constant 3.200000e+01 : f32
    %8 = vector.broadcast %cst_6 : f32 to vector<256x1xf32>
    %9 = arith.divf %7, %8 : vector<256x1xf32>
    %10 = vector.broadcast %9 : vector<256x1xf32> to vector<256x32xf32>
    %11 = arith.subf %1, %10 : vector<256x32xf32>
    %12 = arith.mulf %11, %11 : vector<256x32xf32>
    %cst_7 = arith.constant dense<0.000000e+00> : vector<256xf32>
    %13 = vector.multi_reduction <add>, %12, %cst_7 [1] : vector<256x32xf32> to vector<256xf32>
    %14 = vector.shape_cast %13 : vector<256xf32> to vector<256x1xf32>
    %cst_8 = arith.constant 3.200000e+01 : f32
    %15 = vector.broadcast %cst_8 : f32 to vector<256x1xf32>
    %16 = arith.divf %14, %15 : vector<256x1xf32>
    %17 = vector.broadcast %9 : vector<256x1xf32> to vector<256x32xf32>
    %18 = arith.subf %1, %17 : vector<256x32xf32>
    %cst_9 = arith.constant 9.99999974E-6 : f32
    %19 = vector.broadcast %cst_9 : f32 to vector<256x1xf32>
    %20 = arith.addf %16, %19 : vector<256x1xf32>
    %21 = math.rsqrt %20 : vector<256x1xf32>
    %22 = vector.broadcast %21 : vector<256x1xf32> to vector<256x32xf32>
    %23 = arith.mulf %18, %22 : vector<256x32xf32>
    %24 = vector.shape_cast %3 : vector<32xf32> to vector<1x32xf32>
    %25 = vector.broadcast %24 : vector<1x32xf32> to vector<256x32xf32>
    %26 = arith.mulf %23, %25 : vector<256x32xf32>
    %27 = vector.shape_cast %5 : vector<32xf32> to vector<1x32xf32>
    %28 = vector.broadcast %27 : vector<1x32xf32> to vector<256x32xf32>
    %29 = arith.addf %26, %28 : vector<256x32xf32>
    %30 = arith.truncf %29 : vector<256x32xf32> to vector<256x32xbf16>
    %c0_10 = arith.constant 0 : index
    %c0_11 = arith.constant 0 : index
    %31 = vector.load %arg5[%c0_10, %c0_11] : memref<32x192xbf16, #tpu.memory_space<vmem>>, vector<32x192xbf16>
    %cst_12 = arith.constant dense<0.000000e+00> : vector<256x192xf32>
    %32 = tpu.matmul %30, %31, %cst_12 {dimension_numbers = #tpu.dot_dimension_numbers<[1], [0], [0], [1], [0, 0, 1, 1], [], []>} : vector<256x32xbf16>, vector<32x192xbf16>, vector<256x192xf32> -> vector<256x192xf32>
    %33 = arith.truncf %32 : vector<256x192xf32> to vector<256x192xbf16>
    %c0_13 = arith.constant 0 : index
    %c0_14 = arith.constant 0 : index
    %c0_15 = arith.constant 0 : index
    %34 = vector.load %arg6[%c0_13, %c0_14, %c0_15] : memref<1x256x192xbf16, #tpu.memory_space<vmem>>, vector<1x256x192xbf16>
    %35 = vector.shape_cast %34 : vector<1x256x192xbf16> to vector<256x192xbf16>
    %36 = vector.shape_cast %33 : vector<256x192xbf16> to vector<1x256x192xbf16>
    tpu.vector_store %arg6[%c0_13, %c0_14, %c0_15], %36 {strides = array<i32>} : memref<1x256x192xbf16, #tpu.memory_space<vmem>>, vector<1x256x192xbf16>,
    return
  }
  func.func @transform_0(%arg0: i32, %arg1: i32) -> (i32, i32, i32) {
    %c0_i32 = arith.constant 0 : i32
    %c0_i32_0 = arith.constant 0 : i32
    return %arg0, %arg1, %c0_i32 : i32, i32, i32
  }
  func.func @transform_1(%arg0: i32, %arg1: i32) -> (i32, i32) {
    %c0_i32 = arith.constant 0 : i32
    %c0_i32_0 = arith.constant 0 : i32
    %c0_i32_1 = arith.constant 0 : i32
    return %c0_i32, %c0_i32_0 : i32, i32
  }
  func.func @transform_2(%arg0: i32, %arg1: i32) -> (i32, i32) {
    %c0_i32 = arith.constant 0 : i32
    %c0_i32_0 = arith.constant 0 : i32
    %c0_i32_1 = arith.constant 0 : i32
    return %c0_i32, %c0_i32_0 : i32, i32
  }
  func.func @transform_3(%arg0: i32, %arg1: i32) -> (i32, i32) {
    %c0_i32 = arith.constant 0 : i32
    %c0_i32_0 = arith.constant 0 : i32
    %c0_i32_1 = arith.constant 0 : i32
    return %c0_i32, %c0_i32_0 : i32, i32
  }
  func.func @transform_4(%arg0: i32, %arg1: i32) -> (i32, i32, i32) {
    %c0_i32 = arith.constant 0 : i32
    %c0_i32_0 = arith.constant 0 : i32
    return %arg0, %arg1, %c0_i32 : i32, i32, i32
  }
}

</mosaic_0001>

<bundles_post_ra>
// kernel: tpu_custom_call.1
= control target key start
LH: loop header
LB: loop body
LE: loop exit
PB: predicated region body
PF: predicated region fallthrough
CT: control target
= control target key end

     0   :  { %s1696_s15 = smov 0   ;;  %s1698_s16 = smov 0   ;;  %s2784_s0 = inlined_call_operand.vmem [shape: f32[2,256,32], index: 0, kind: input, shape index: {}]   ;;  %s2785_s1 = inlined_call_operand.vmem [shape: f32[1,32], index: 1, kind: input, shape index: {}]   ;;  %s2786_s2 = inlined_call_operand.vmem [shape: f32[1,32], index: 2, kind: input, shape index: {}]   ;;  %s2787_s3 = inlined_call_operand.vmem [shape: bf16[32,192], index: 3, kind: input, shape index: {}]   ;;  %s2788_s4 = inlined_call_operand.vmem [shape: bf16[2,256,192], index: 4, kind: output, shape index: {}]  }
   0x1   :  { %s1700_s17 = smov 0  }
   0x2 LB: > { %s26_s18 = sadd.s32 1, %s1664_s16  ;;  %p1486_p0 = scmp.ge.s32.totalorder %s1668_s17, 1  ;;  %s1668_s17 = sphi %s1700_s17, %s14_s17   ;;  %s1664_s16 = sphi %s1698_s16, %s2812_s16   ;;  %s1660_s15 = sphi %s1696_s15, %s2811_s15  }
   0x3   : > { %p28_p1 = scmp.ge.s32.totalorder %s26_s18, 2  ;;  %p183_p2 = scmp.lt.s32.totalorder %s1668_s17, 3 }
   0x5   : > { %s2814_s18 = smov (%p28_p1, %s26_s18), 0  ;;  %p184_p3 = pnand %p1486_p0, %p183_p2 }
   0x6   : > { %p219_p4 = scmp.lt.s32.totalorder (!%p184_p3), %s1660_s15, 1 }
   0x7   : > { %187 = sbr.rel (%p184_p3) target bundleno = 628 (0x274), region = 36 }
   0xc   : > { %s2816_s15 = smov (!%p219_p4, %s1660_s15), 1  ;;  %vm274_vm0 = vcmask 261120   ;;  %v1670_v44 = vmov 32.0  }
   0xd   : > { %s1541_s19 = sshll.u32 %s2816_s15, 8  ;;  %1578 = vrcp.f32 %v1670_v44 }
   0xe   : > { %s1722_s22 = scalar_lea.vmem %s2784_s0, %s1541_s19  ;;  %s2589_s24 = scalar_lea.vmem %s2788_s4, %s1541_s19 }
   0xf   : > { %v1725_v0 = vld [vmem:[%s1722_s22 + $0x90] sm:$0xff]  ;;  %v1728_v1 = vld [vmem:[%s1722_s22 + $0x80] sm:$0xff]  ;;  %v1740_v6 = vld [vmem:[%s1722_s22 + $0x98] sm:$0xff] }
  0x10   : > { %v1731_v2 = vld [vmem:[%s1722_s22] sm:$0xff]  ;;  %v329_v3 = vsel %vm274_vm0, %v1725_v0, 0.0  ;;  %v323_v4 = vsel %vm274_vm0, %v1728_v1, 0.0  ;;  %v1743_v7 = vld [vmem:[%s1722_s22 + $0x88] sm:$0xff]  ;;  %v332_v9 = vsel %vm274_vm0, %v1740_v6, 0.0  ;;  %v1755_v12 = vld [vmem:[%s1722_s22 + $0x10] sm:$0xff] }
  0x11   : > { %v275_v5 = vsel %vm274_vm0, %v1731_v2, 0.0  ;;  %330 = vadd.xlane.f32.xlu2 %v329_v3  ;;  %324 = vadd.xlane.f32.xlu0 %v323_v4  ;;  %v1746_v8 = vld [vmem:[%s1722_s22 + $0x8] sm:$0xff]  ;;  %v326_v10 = vsel %vm274_vm0, %v1743_v7, 0.0  ;;  %v1758_v13 = vld [vmem:[%s1722_s22 + $0xa0] sm:$0xff]  ;;  %v1761_v14 = vld [vmem:[%s1722_s22 + $0x18] sm:$0xff]  ;;  %v281_v15 = vsel %vm274_vm0, %v1755_v12, 0.0 }
  0x12   : > { %276 = vadd.xlane.f32.xlu1 %v275_v5  ;;  %v278_v11 = vsel %vm274_vm0, %v1746_v8, 0.0  ;;  %v335_v16 = vsel %vm274_vm0, %v1758_v13, 0.0  ;;  %v284_v17 = vsel %vm274_vm0, %v1761_v14, 0.0  ;;  %v1770_v18 = vld [vmem:[%s1722_s22 + $0x28] sm:$0xff]  ;;  %v1776_v20 = vld [vmem:[%s1722_s22 + $0x20] sm:$0xff]  ;;  %v1785_v24 = vld [vmem:[%s1722_s22 + $0xb0] sm:$0xff] }
  0x13   : > { %v1773_v19 = vld [vmem:[%s1722_s22 + $0xa8] sm:$0xff]  ;;  %v290_v21 = vsel %vm274_vm0, %v1770_v18, 0.0  ;;  %v287_v23 = vsel %vm274_vm0, %v1776_v20, 0.0  ;;  %v1788_v25 = vld [vmem:[%s1722_s22 + $0xb8] sm:$0xff]  ;;  %v341_v27 = vsel %vm274_vm0, %v1785_v24, 0.0  ;;  %v1803_v31 = vld [vmem:[%s1722_s22 + $0x30] sm:$0xff]  ;;  %v1579_v45 = vpop.eup %1578 }
  0x14   : > { %v338_v22 = vsel %vm274_vm0, %v1773_v19, 0.0  ;;  %v1791_v26 = vld [vmem:[%s1722_s22 + $0x38] sm:$0xff]  ;;  %v344_v28 = vsel %vm274_vm0, %v1788_v25, 0.0  ;;  %v1800_v30 = vld [vmem:[%s1722_s22 + $0xc8] sm:$0xff]  ;;  %v1806_v32 = vld [vmem:[%s1722_s22 + $0xc0] sm:$0xff]  ;;  %v293_v34 = vsel %vm274_vm0, %v1803_v31, 0.0  ;;  %vm376_vm1 = vweird.f32 %v1579_v45 }
  0x15   : > { %v296_v29 = vsel %vm274_vm0, %v1791_v26, 0.0  ;;  %v350_v33 = vsel %vm274_vm0, %v1800_v30, 0.0  ;;  %v347_v35 = vsel %vm274_vm0, %v1806_v32, 0.0  ;;  %v1815_v36 = vld [vmem:[%s1722_s22 + $0x40] sm:$0xff]  ;;  %v1818_v37 = vld [vmem:[%s1722_s22 + $0x48] sm:$0xff]  ;;  %v1821_v38 = vld [vmem:[%s1722_s22 + $0xd8] sm:$0xff] }
  0x16   : > { %v299_v39 = vsel %vm274_vm0, %v1815_v36, 0.0  ;;  %v302_v40 = vsel %vm274_vm0, %v1818_v37, 0.0  ;;  %v356_v41 = vsel %vm274_vm0, %v1821_v38, 0.0  ;;  %v1830_v42 = vld [vmem:[%s1722_s22 + $0xd0] sm:$0xff]  ;;  %v372_v46 = vmul.f32 32.0, %v1579_v45  ;;  %v1890_v44 = vld [vmem:[%s1722_s22 + $0xe8] sm:$0xff] }
  0x17   : > { %v353_v43 = vsel %vm274_vm0, %v1830_v42, 0.0 }
  0x18   : > { %v373_v47 = vsub.f32 1.0, %v372_v46  ;;  %v1894_v46 = vld [vmem:[%s1722_s22 + $0x50] sm:$0xff] }
  0x19   : > { %333 = vadd.xlane.f32.xlu2 %v332_v9  ;;  %327 = vadd.xlane.f32.xlu0 %v326_v10 }
  0x1a   : > { %279 = vadd.xlane.f32.xlu1 %v278_v11  ;;  %v374_v48 = vmul.f32 %v1579_v45, %v373_v47 }
  0x1c   : > { %v375_v49 = vadd.f32 %v1579_v45, %v374_v48  ;;  %v362_v48 = vsel %vm274_vm0, %v1890_v44, 0.0 }
  0x1e   : > { %v1834_v50 = vsel %vm376_vm1, %v1579_v45, %v375_v49  ;;  %v305_v49 = vsel %vm274_vm0, %v1894_v46, 0.0 }
  0x21   : > { %282 = vadd.xlane.f32.xlu0 %v281_v15  ;;  %336 = vadd.xlane.f32.xlu2 %v335_v16 }
  0x22   : > { %285 = vadd.xlane.f32.xlu1 %v284_v17 }
  0x29   : > { %291 = vadd.xlane.f32.xlu2 %v290_v21  ;;  %339 = vadd.xlane.f32.xlu0 %v338_v22 }
  0x2a   : > { %288 = vadd.xlane.f32.xlu1 %v287_v23  ;;  %v1875_v23 = vld [vmem:[%s1722_s22 + $0x58] sm:$0xff] }
  0x31   : > { %342 = vadd.xlane.f32.xlu2 %v341_v27  ;;  %345 = vadd.xlane.f32.xlu0 %v344_v28 }
  0x32   : > { %297 = vadd.xlane.f32.xlu1 %v296_v29 }
  0x39   : > { %351 = vadd.xlane.f32.xlu2 %v350_v33  ;;  %294 = vadd.xlane.f32.xlu0 %v293_v34  ;;  %v308_v33 = vsel %vm274_vm0, %v1875_v23, 0.0 }
  0x3a   : > { %348 = vadd.xlane.f32.xlu1 %v347_v35 }
  0x41   : > { %300 = vadd.xlane.f32.xlu2 %v299_v39  ;;  %303 = vadd.xlane.f32.xlu0 %v302_v40 }
  0x42   : > { %357 = vadd.xlane.f32.xlu1 %v356_v41 }
  0x49   : > { %354 = vadd.xlane.f32.xlu0 %v353_v43 }
  0x84   : > { %v331_v51 = vpop.xlane.xlu2 %330  ;;  %v325_v52 = vpop.xlane.xlu0 %324 }
  0x85   : > { %v394_v53 = vmul.f32 %v1834_v50, %v325_v52  ;;  %v277_v54 = vpop.xlane.xlu1 %276  ;;  %v396_v27 = vmul.f32 %v1834_v50, %v331_v51 }
  0x86   : > { %v378_v3 = vmul.f32 %v1834_v50, %v277_v54 }
  0x87   : > { %v1838_v55 = vsub.f32 %v1728_v1, %v394_v53  ;;  %v1885_v35 = vsub.f32 %v1725_v0, %v396_v27 }
  0x88   : > { %v1863_v15 = vsub.f32 %v1731_v2, %v378_v3 }
  0x89   : > { %v458_v56 = vmul.f32 %v1838_v55, %v1838_v55  ;;  %v460_v47 = vmul.f32 %v1885_v35, %v1885_v35 }
  0x8a   : > { %v442_v2 = vmul.f32 %v1863_v15, %v1863_v15 }
  0x8b   : > { %v522_v57 = vsel %vm274_vm0, %v458_v56, 0.0  ;;  %v528_v54 = vsel %vm274_vm0, %v460_v47, 0.0 }
  0x8c   : > { %v334_v58 = vpop.xlane.xlu2 %333  ;;  %v328_v59 = vpop.xlane.xlu0 %327  ;;  %523 = vadd.xlane.f32.xlu0 %v522_v57 }
  0x8d   : > { %v397_v60 = vmul.f32 %v1834_v50, %v334_v58  ;;  %v395_v61 = vmul.f32 %v1834_v50, %v328_v59  ;;  %v280_v62 = vpop.xlane.xlu1 %279 }
  0x8e   : > { %v379_v63 = vmul.f32 %v1834_v50, %v280_v62 }
  0x8f   : > { %v1848_v1 = vsub.f32 %v1740_v6, %v397_v60  ;;  %v1851_v4 = vsub.f32 %v1743_v7, %v395_v61 }
  0x90   : > { %v1854_v5 = vsub.f32 %v1746_v8, %v379_v63 }
  0x91   : > { %v461_v9 = vmul.f32 %v1848_v1, %v1848_v1  ;;  %v459_v10 = vmul.f32 %v1851_v4, %v1851_v4 }
  0x92   : > { %v443_v11 = vmul.f32 %v1854_v5, %v1854_v5 }
  0x93   : > { %v531_v6 = vsel %vm274_vm0, %v461_v9, 0.0  ;;  %v525_v7 = vsel %vm274_vm0, %v459_v10, 0.0  ;;  %v1931_v9 = vld [vmem:[%s1722_s22 + $0x60] sm:$0xff] }
  0x94   : > { %532 = vadd.xlane.f32.xlu0 %v531_v6  ;;  %v283_v8 = vpop.xlane.xlu0 %282  ;;  %526 = vadd.xlane.f32.xlu1 %v525_v7  ;;  %v477_v16 = vsel %vm274_vm0, %v443_v11, 0.0  ;;  %v337_v17 = vpop.xlane.xlu2 %336  ;;  %v311_v7 = vsel %vm274_vm0, %v1931_v9, 0.0 }
  0x95   : > { %v380_v21 = vmul.f32 %v1834_v50, %v283_v8  ;;  %478 = vadd.xlane.f32.xlu2 %v477_v16  ;;  %v286_v29 = vpop.xlane.xlu1 %285  ;;  %v398_v58 = vmul.f32 %v1834_v50, %v337_v17 }
  0x96   : > { %v381_v43 = vmul.f32 %v1834_v50, %v286_v29  ;;  %v1953_v29 = vld [vmem:[%s1722_s22 + $0xe0] sm:$0xff] }
  0x97   : > { %v1870_v22 = vsub.f32 %v1755_v12, %v380_v21  ;;  %v474_v12 = vsel %vm274_vm0, %v442_v2, 0.0  ;;  %v1927_v63 = vsub.f32 %v1758_v13, %v398_v58 }
  0x98   : > { %v1906_v51 = vsub.f32 %v1761_v14, %v381_v43 }
  0x99   : > { %v444_v28 = vmul.f32 %v1870_v22, %v1870_v22  ;;  %v462_v11 = vmul.f32 %v1927_v63, %v1927_v63 }
  0x9a   : > { %v445_v56 = vmul.f32 %v1906_v51, %v1906_v51 }
  0x9b   : > { %v480_v34 = vsel %vm274_vm0, %v444_v28, 0.0  ;;  %v534_v16 = vsel %vm274_vm0, %v462_v11, 0.0  ;;  %v2003_v11 = vld [vmem:[%s1722_s22 + $0xf0] sm:$0xff] }
  0x9c   : > { %481 = vadd.xlane.f32.xlu0 %v480_v34  ;;  %475 = vadd.xlane.f32.xlu1 %v474_v12  ;;  %v292_v39 = vpop.xlane.xlu2 %291  ;;  %v340_v40 = vpop.xlane.xlu0 %339  ;;  %v483_v60 = vsel %vm274_vm0, %v445_v56, 0.0 }
  0x9d   : > { %309 = vadd.xlane.f32.xlu2 %v308_v33  ;;  %v383_v41 = vmul.f32 %v1834_v50, %v292_v39  ;;  %v399_v45 = vmul.f32 %v1834_v50, %v340_v40  ;;  %v289_v53 = vpop.xlane.xlu1 %288  ;;  %v359_v40 = vsel %vm274_vm0, %v1953_v29, 0.0 }
  0x9e   : > { %v382_v57 = vmul.f32 %v1834_v50, %v289_v53 }
  0x9f   : > { %v1899_v0 = vsub.f32 %v1770_v18, %v383_v41  ;;  %v1909_v52 = vsub.f32 %v1773_v19, %v399_v45 }
  0xa0   : > { %v1924_v62 = vsub.f32 %v1776_v20, %v382_v57 }
  0xa1   : > { %v447_v18 = vmul.f32 %v1899_v0, %v1899_v0  ;;  %v463_v14 = vmul.f32 %v1909_v52, %v1909_v52 }
  0xa2   : > { %v446_v10 = vmul.f32 %v1924_v62, %v1924_v62 }
  0xa3   : > { %v489_v59 = vsel %vm274_vm0, %v447_v18, 0.0  ;;  %v537_v61 = vsel %vm274_vm0, %v463_v14, 0.0 }
  0xa4   : > { %363 = vadd.xlane.f32.xlu0 %v362_v48  ;;  %306 = vadd.xlane.f32.xlu1 %v305_v49  ;;  %v343_v19 = vpop.xlane.xlu2 %342  ;;  %v346_v6 = vpop.xlane.xlu0 %345  ;;  %v486_v8 = vsel %vm274_vm0, %v446_v10, 0.0 }
  0xa5   : > { %529 = vadd.xlane.f32.xlu2 %v528_v54  ;;  %v400_v3 = vmul.f32 %v1834_v50, %v343_v19  ;;  %v298_v17 = vpop.xlane.xlu1 %297  ;;  %v401_v27 = vmul.f32 %v1834_v50, %v346_v6  ;;  %v2008_v6 = vld [vmem:[%s1722_s22 + $0x78] sm:$0xff] }
  0xa6   : > { %v385_v28 = vmul.f32 %v1834_v50, %v298_v17 }
  0xa7   : > { %v1938_v13 = vsub.f32 %v1785_v24, %v400_v3  ;;  %v1949_v24 = vld [vmem:[%s1722_s22 + $0x68] sm:$0xff]  ;;  %v1960_v12 = vsub.f32 %v1788_v25, %v401_v27 }
  0xa8   : > { %v314_v39 = vsel %vm274_vm0, %v1949_v24, 0.0  ;;  %v1967_v41 = vsub.f32 %v1791_v26, %v385_v28  ;;  %v2023_v28 = vld [vmem:[%s1722_s22 + $0x70] sm:$0xff] }
  0xa9   : > { %v464_v2 = vmul.f32 %v1938_v13, %v1938_v13  ;;  %v465_v48 = vmul.f32 %v1960_v12, %v1960_v12 }
  0xaa   : > { %v449_v26 = vmul.f32 %v1967_v41, %v1967_v41 }
  0xab   : > { %v540_v34 = vsel %vm274_vm0, %v464_v2, 0.0  ;;  %v543_v18 = vsel %vm274_vm0, %v465_v48, 0.0 }
  0xac   : > { %490 = vadd.xlane.f32.xlu0 %v489_v59  ;;  %484 = vadd.xlane.f32.xlu1 %v483_v60  ;;  %v352_v20 = vpop.xlane.xlu2 %351  ;;  %v295_v45 = vpop.xlane.xlu0 %294  ;;  %v495_v56 = vsel %vm274_vm0, %v449_v26, 0.0  ;;  %v1546_v26 = vld [vmem:[%s2787_s3 + $0x14] sm:$0xf0] }
  0xad   : > { %538 = vadd.xlane.f32.xlu2 %v537_v61  ;;  %v403_v21 = vmul.f32 %v1834_v50, %v352_v20  ;;  %v384_v47 = vmul.f32 %v1834_v50, %v295_v45  ;;  %v349_v14 = vpop.xlane.xlu1 %348 }
  0xae   : > { %v402_v19 = vmul.f32 %v1834_v50, %v349_v14 }
  0xaf   : > { %v1956_v33 = vsub.f32 %v1800_v30, %v403_v21  ;;  %v1982_v54 = vsub.f32 %v1803_v31, %v384_v47  ;;  %v1992_v31 = vld [vmem:[%s1722_s22 + $0xf8] sm:$0xff] }
  0xb0   : > { %v368_v61 = vsel %vm274_vm0, %v1992_v31, 0.0  ;;  %v1999_v3 = vsub.f32 %v1806_v32, %v402_v19  ;;  %v365_v32 = vsel %vm274_vm0, %v2003_v11, 0.0  ;;  %v1544_v19 = vld [vmem:[%s2787_s3 + $0x4] sm:$0xf0] }
  0xb1   : > { %v467_v25 = vmul.f32 %v1956_v33, %v1956_v33 }
  0xb2   : > { %v466_v20 = vmul.f32 %v1999_v3, %v1999_v3 }
  0xb3   : > { %v549_v53 = vsel %vm274_vm0, %v467_v25, 0.0 }
  0xb4   : > { %312 = vadd.xlane.f32.xlu0 %v311_v7  ;;  %535 = vadd.xlane.f32.xlu1 %v534_v16  ;;  %v301_v43 = vpop.xlane.xlu2 %300  ;;  %v304_v58 = vpop.xlane.xlu0 %303  ;;  %v546_v16 = vsel %vm274_vm0, %v466_v20, 0.0 }
  0xb5   : > { %487 = vadd.xlane.f32.xlu2 %v486_v8  ;;  %v386_v30 = vmul.f32 %v1834_v50, %v301_v43  ;;  %v387_v10 = vmul.f32 %v1834_v50, %v304_v58  ;;  %v320_v8 = vsel %vm274_vm0, %v2008_v6, 0.0  ;;  %v358_v21 = vpop.xlane.xlu1 %357  ;;  %v1543_v58 = vld [vmem:[%s2787_s3 + $0x4] sm:$0xf] }
  0xb7   : > { %v1978_v49 = vsub.f32 %v1815_v36, %v386_v30  ;;  %v448_v36 = vmul.f32 %v1982_v54, %v1982_v54  ;;  %v2011_v7 = vsub.f32 %v1818_v37, %v387_v10  ;;  %v405_v37 = vmul.f32 %v1834_v50, %v358_v21 }
  0xb9   : > { %v450_v57 = vmul.f32 %v1978_v49, %v1978_v49  ;;  %v492_v60 = vsel %vm274_vm0, %v448_v36, 0.0  ;;  %v451_v27 = vmul.f32 %v2011_v7, %v2011_v7  ;;  %v2032_v43 = vsub.f32 %v1821_v38, %v405_v37  ;;  %v1501_v38 = vld [vmem:[%s2787_s3 + $0x10] sm:$0xf]  ;;  %v1493_v36 = vld [vmem:[%s2787_s3] sm:$0xf] }
  0xbb   : > { %v498_v59 = vsel %vm274_vm0, %v450_v57, 0.0  ;;  %v469_v30 = vmul.f32 %v2032_v43, %v2032_v43 }
  0xbc   : > { %541 = vadd.xlane.f32.xlu0 %v540_v34  ;;  %315 = vadd.xlane.f32.xlu1 %v314_v39  ;;  %v355_v17 = vpop.xlane.xlu0 %354  ;;  %v501_v39 = vsel %vm274_vm0, %v451_v27, 0.0 }
  0xbd   : > { %360 = vadd.xlane.f32.xlu2 %v359_v40  ;;  %v404_v2 = vmul.f32 %v1834_v50, %v355_v17  ;;  %v317_v40 = vsel %vm274_vm0, %v2023_v28, 0.0 }
  0xbf   : > { %v2026_v34 = vsub.f32 %v1830_v42, %v404_v2  ;;  %v555_v42 = vsel %vm274_vm0, %v469_v30, 0.0 }
  0xc1   : > { %v468_v45 = vmul.f32 %v2026_v34, %v2026_v34 }
  0xc3   : > { %v552_v25 = vsel %vm274_vm0, %v468_v45, 0.0 }
  0xc4   : > { %550 = vadd.xlane.f32.xlu0 %v549_v53  ;;  %544 = vadd.xlane.f32.xlu1 %v543_v18  ;;  %v1545_v53 = vld [vmem:[%s2787_s3 + $0x14] sm:$0xf]  ;;  %v1502_v18 = vor.u32 %v1546_v26, %v1501_v38 }
  0xc5   : > { %496 = vadd.xlane.f32.xlu2 %v495_v56  ;;  %v1503_v56 = vld [vmem:[%s2787_s3 + $0x18] sm:$0xf0] }
  0xc6   : > { %v1506_v57 = vor.u32 %v1545_v53, %v1503_v56  ;;  %1547 = vmatpush.bf16.msra.mxu2 %v1502_v18  ;;  %1150 = vmatpush.bf16.msra.mxu0 %v1502_v18 }
  0xc8   : > { %1549 = vmatpush.bf16.msra.mxu3 %v1506_v57  ;;  %1239 = vmatpush.bf16.msra.mxu1 %v1506_v57 }
  0xcc   : > { %499 = vadd.xlane.f32.xlu0 %v498_v59  ;;  %493 = vadd.xlane.f32.xlu1 %v492_v60  ;;  %v1494_v59 = vor.u32 %v1544_v19, %v1493_v36  ;;  %v1495_v60 = vld [vmem:[%s2787_s3 + $0x8] sm:$0xf0] }
  0xcd   : > { %369 = vadd.xlane.f32.xlu2 %v368_v61  ;;  %v1498_v61 = vor.u32 %v1543_v58, %v1495_v60 }
  0xce   : > { %1548 = vmatpush.bf16.msra.mxu2 %v1494_v59  ;;  %1151 = vmatpush.bf16.msra.mxu0 %v1494_v59 }
  0xcf   : > { %1550 = vmatpush.bf16.msra.mxu3 %v1498_v61  ;;  %1240 = vmatpush.bf16.msra.mxu1 %v1498_v61 }
  0xd4   : > { %366 = vadd.xlane.f32.xlu1 %v365_v32  ;;  %321 = vadd.xlane.f32.xlu0 %v320_v8 }
  0xd5   : > { %547 = vadd.xlane.f32.xlu2 %v546_v16 }
  0xdc   : > { %502 = vadd.xlane.f32.xlu1 %v501_v39 }
  0xdd   : > { %318 = vadd.xlane.f32.xlu2 %v317_v40 }
  0xe4   : > { %553 = vadd.xlane.f32.xlu1 %v552_v25 }
  0xe5   : > { %556 = vadd.xlane.f32.xlu2 %v555_v42 }
  0xff   : > { %v524_v47 = vpop.xlane.xlu0 %523 }
 0x100   : > { %v586_v48 = vmul.f32 %v524_v47, %v1834_v50 }
 0x102   : > { %v618_v14 = vadd.f32 1e-05, %v586_v48 }
 0x104   : > { %1580 = vrsqrt.f32 %v618_v14  ;;  %vm800_vm3 = vweird.f32 %v618_v14 }
 0x107   : > { %v533_v10 = vpop.xlane.xlu0 %532  ;;  %v527_v20 = vpop.xlane.xlu1 %526 }
 0x108   : > { %v589_v32 = vmul.f32 %v533_v10, %v1834_v50  ;;  %v479_v8 = vpop.xlane.xlu2 %478  ;;  %v587_v16 = vmul.f32 %v527_v20, %v1834_v50 }
 0x109   : > { %v571_v17 = vmul.f32 %v479_v8, %v1834_v50 }
 0x10a   : > { %v1581_v21 = vpop.eup %1580  ;;  %v2068_v2 = vadd.f32 1e-05, %v589_v32  ;;  %v2070_v27 = vadd.f32 1e-05, %v587_v16 }
 0x10b   : > { %v795_v37 = vmul.f32 %v1581_v21, %v618_v14  ;;  %v2072_v39 = vadd.f32 1e-05, %v571_v17  ;;  %vm801_vm2 = vweird.f32 %v1581_v21 }
 0x10c   : > { %1582 = vrsqrt.f32 %v2068_v2  ;;  %vm2100_vm4 = vmor %vm800_vm3, %vm801_vm2  ;;  %vm830_vm5 = vweird.f32 %v2068_v2  ;;  %vm810_vm7 = vweird.f32 %v2070_v27 }
 0x10d   : > { %v796_v40 = vmul.f32 %v1581_v21, %v795_v37  ;;  %1584 = vrsqrt.f32 %v2072_v39  ;;  %vm650_vm6 = vweird.f32 %v2072_v39 }
 0x10e   : > { %1586 = vrsqrt.f32 %v2070_v27 }
 0x10f   : > { %v797_v45 = vmul.f32 0.5, %v796_v40  ;;  %v482_v30 = vpop.xlane.xlu0 %481  ;;  %v476_v25 = vpop.xlane.xlu1 %475 }
 0x110   : > { %v572_v42 = vmul.f32 %v482_v30, %v1834_v50  ;;  %v310_v47 = vpop.xlane.xlu2 %309  ;;  %v570_v48 = vmul.f32 %v476_v25, %v1834_v50 }
 0x111   : > { %v798_v38 = vsub.f32 1.5, %v797_v45  ;;  %v389_v26 = vmul.f32 %v1834_v50, %v310_v47 }
 0x112   : > { %v2080_v53 = vpop.eup %1582  ;;  %v2082_v18 = vadd.f32 1e-05, %v572_v42  ;;  %v2084_v56 = vadd.f32 1e-05, %v570_v48 }
 0x113   : > { %v2086_v57 = vpop.eup %1584  ;;  %v825_v36 = vmul.f32 %v2080_v53, %v2068_v2  ;;  %v2091_v19 = vsub.f32 %v1875_v23, %v389_v26  ;;  %v799_v59 = vmul.f32 %v1581_v21, %v798_v38  ;;  %vm831_vm9 = vweird.f32 %v2080_v53 }
 0x114   : > { %v1587_v58 = vpop.eup %1586  ;;  %v645_v60 = vmul.f32 %v2086_v57, %v2072_v39  ;;  %1588 = vrsqrt.f32 %v2082_v18  ;;  %vm651_vm10 = vweird.f32 %v2086_v57  ;;  %vm660_vm12 = vweird.f32 %v2082_v18  ;;  %vm2186_vm1 = vmor %vm830_vm5, %vm831_vm9 }
 0x115   : > { %v826_v61 = vmul.f32 %v2080_v53, %v825_v36  ;;  %v805_v10 = vmul.f32 %v1587_v58, %v2070_v27  ;;  %1590 = vrsqrt.f32 %v2084_v56  ;;  %v453_v16 = vmul.f32 %v2091_v19, %v2091_v19  ;;  %vm2158_vm13 = vmor %vm650_vm6, %vm651_vm10 }
 0x116   : > { %v646_v20 = vmul.f32 %v2086_v57, %v645_v60  ;;  %v803_v37 = vsel %vm2100_vm4, %v1581_v21, %v799_v59  ;;  %vm811_vm8 = vweird.f32 %v1587_v58  ;;  %vm640_vm15 = vweird.f32 %v2084_v56 }
 0x117   : > { %v806_v32 = vmul.f32 %v1587_v58, %v805_v10  ;;  %v364_v8 = vpop.xlane.xlu0 %363  ;;  %v307_v17 = vpop.xlane.xlu1 %306  ;;  %v827_v40 = vmul.f32 0.5, %v826_v61  ;;  %v507_v48 = vsel %vm274_vm0, %v453_v16, 0.0  ;;  %v970_v36 = vmul.f32 %v803_v37, %v1838_v55  ;;  %v2126_v61 = vld [vmem:[%s2785_s1] ss:$0 sm:$0xff]  ;;  %vm812_vm11 = vmor %vm810_vm7, %vm811_vm8 }
 0x118   : > { %v647_v45 = vmul.f32 0.5, %v646_v20  ;;  %v530_v14 = vpop.xlane.xlu2 %529  ;;  %v388_v30 = vmul.f32 %v1834_v50, %v307_v17  ;;  %v407_v42 = vmul.f32 %v1834_v50, %v364_v8  ;;  %508 = vadd.xlane.f32.xlu1 %v507_v48 }
 0x119   : > { %v807_v25 = vmul.f32 0.5, %v806_v32  ;;  %v588_v47 = vmul.f32 %v530_v14, %v1834_v50  ;;  %v828_v20 = vsub.f32 1.5, %v827_v40 }
 0x11a   : > { %v2112_v38 = vpop.eup %1588  ;;  %v648_v26 = vsub.f32 1.5, %v647_v45  ;;  %v2118_v21 = vsub.f32 %v1894_v46, %v388_v30  ;;  %v2136_v16 = vsub.f32 %v1890_v44, %v407_v42 }
 0x11b   : > { %v808_v59 = vsub.f32 1.5, %v807_v25  ;;  %v655_v60 = vmul.f32 %v2112_v38, %v2082_v18  ;;  %v1591_v10 = vpop.eup %1590  ;;  %v2129_v23 = vadd.f32 1e-05, %v588_v47  ;;  %v1005_v25 = vmul.f32 %v2126_v61, %v970_v36 }
 0x11c   : > { %v452_v46 = vmul.f32 %v2118_v21, %v2118_v21  ;;  %v635_v8 = vmul.f32 %v1591_v10, %v2084_v56  ;;  %v649_v17 = vmul.f32 %v2086_v57, %v648_v26  ;;  %v829_v44 = vmul.f32 %v2080_v53, %v828_v20  ;;  %v2152_v26 = vld [vmem:[%s2786_s2] ss:$0 sm:$0xff] }
 0x11d   : > { %v809_v55 = vmul.f32 %v1587_v58, %v808_v59  ;;  %v656_v32 = vmul.f32 %v2112_v38, %v655_v60  ;;  %1592 = vrsqrt.f32 %v2129_v23  ;;  %v471_v60 = vmul.f32 %v2136_v16, %v2136_v16 }
 0x11e   : > { %v636_v45 = vmul.f32 %v1591_v10, %v635_v8  ;;  %v504_v27 = vsel %vm274_vm0, %v452_v46, 0.0  ;;  %v653_v20 = vsel %vm2158_vm13, %v2086_v57, %v649_v17  ;;  %vm641_vm14 = vweird.f32 %v1591_v10 }
 0x11f   : > { %v813_v37 = vsel %vm812_vm11, %v1587_v58, %v809_v55  ;;  %v657_v40 = vmul.f32 0.5, %v656_v32  ;;  %v491_v14 = vpop.xlane.xlu0 %490  ;;  %v485_v30 = vpop.xlane.xlu1 %484  ;;  %505 = vadd.xlane.f32.xlu0 %v504_v27  ;;  %vm661_vm2 = vweird.f32 %v2112_v38  ;;  %vm642_vm3 = vmor %vm640_vm15, %vm641_vm14  ;;  %v561_v2 = vsel %vm274_vm0, %v471_v60, 0.0 }
 0x120   : > { %v971_v42 = vmul.f32 %v813_v37, %v1851_v4  ;;  %v575_v47 = vmul.f32 %v491_v14, %v1834_v50  ;;  %v539_v48 = vpop.xlane.xlu2 %538  ;;  %v637_v36 = vmul.f32 0.5, %v636_v45  ;;  %v573_v59 = vmul.f32 %v485_v30, %v1834_v50  ;;  %vm2211_vm4 = vmor %vm660_vm12, %vm661_vm2 }
 0x121   : > { %v591_v4 = vmul.f32 %v539_v48, %v1834_v50  ;;  %v658_v46 = vsub.f32 1.5, %v657_v40  ;;  %v1040_v14 = vadd.f32 %v2152_v26, %v1005_v25  ;;  %v955_v40 = vmul.f32 %v653_v20, %v1854_v5 }
 0x122   : > { %v2169_v55 = vadd.f32 1e-05, %v575_v47  ;;  %v1006_v39 = vmul.f32 %v2126_v61, %v971_v42  ;;  %v638_v32 = vsub.f32 1.5, %v637_v36  ;;  %v2174_v37 = vadd.f32 1e-05, %v573_v59 }
 0x123   : > { %v2172_v8 = vadd.f32 1e-05, %v591_v4  ;;  %v2176_v45 = vpop.eup %1592  ;;  %v833_v25 = vsel %vm2186_vm1, %v2080_v53, %v829_v44  ;;  %v659_v42 = vmul.f32 %v2112_v38, %v658_v46  ;;  %v990_v20 = vmul.f32 %v2126_v61, %v955_v40 }
 0x124   : > { %1594 = vrsqrt.f32 %v2169_v55  ;;  %v1041_v57 = vadd.f32 %v2152_v26, %v1006_v39  ;;  %v639_v30 = vmul.f32 %v1591_v10, %v638_v32  ;;  %v815_v56 = vmul.f32 %v2176_v45, %v2129_v23 }
 0x125   : > { %1596 = vrsqrt.f32 %v2172_v8  ;;  %v973_v59 = vmul.f32 %v833_v25, %v1848_v1  ;;  %v663_v1 = vsel %vm2211_vm4, %v2112_v38, %v659_v42  ;;  %vm821_vm5 = vweird.f32 %v2176_v45 }
 0x126   : > { %v643_v47 = vsel %vm642_vm3, %v1591_v10, %v639_v30  ;;  %v816_v5 = vmul.f32 %v2176_v45, %v815_v56  ;;  %1598 = vrsqrt.f32 %v2174_v37  ;;  %v1064_v48 = vpack.c.bf16 %v1041_v57, %v1040_v14 }
 0x127   : > { %v313_v27 = vpop.xlane.xlu0 %312  ;;  %v536_v58 = vpop.xlane.xlu1 %535  ;;  %v954_v36 = vmul.f32 %v643_v47, %v1863_v15  ;;  %562 = vadd.xlane.f32.xlu0 %v561_v2  ;;  %vm820_vm6 = vweird.f32 %v2129_v23  ;;  %v1025_v2 = vadd.f32 %v2152_v26, %v990_v20  ;;  %v956_v23 = vmul.f32 %v663_v1, %v1870_v22 }
 0x128   : > { %v390_v53 = vmul.f32 %v1834_v50, %v313_v27  ;;  %v488_v44 = vpop.xlane.xlu2 %487  ;;  %v590_v4 = vmul.f32 %v536_v58, %v1834_v50  ;;  %v817_v60 = vmul.f32 0.5, %v816_v5  ;;  %1515 = vmatmul.msk.bf16.vlgmr.msra.gmra.mxu2 %vm274_vm0, %v1064_v48  ;;  %1531 = vmatmul.msk.bf16.vlgmr.msra.gmra.mxu3 %vm274_vm0, %v1064_v48  ;;  %vm822_vm7 = vmor %vm820_vm6, %vm821_vm5  ;;  %v1008_v5 = vmul.f32 %v2126_v61, %v973_v59 }
 0x129   : > { %v574_v15 = vmul.f32 %v488_v44, %v1834_v50  ;;  %v989_v32 = vmul.f32 %v2126_v61, %v954_v36  ;;  %vm670_vm8 = vweird.f32 %v2174_v37  ;;  %vm850_vm9 = vweird.f32 %v2172_v8 }
 0x12a   : > { %v2219_v46 = vpop.eup %1594  ;;  %v2225_v18 = vsub.f32 %v1931_v9, %v390_v53  ;;  %v2227_v39 = vadd.f32 1e-05, %v590_v4  ;;  %v818_v14 = vsub.f32 1.5, %v817_v60  ;;  %vm690_vm11 = vweird.f32 %v2169_v55 }
 0x12b   : > { %v685_v57 = vmul.f32 %v2219_v46, %v2169_v55  ;;  %v2233_v17 = vadd.f32 1e-05, %v574_v15  ;;  %v2235_v40 = vpop.eup %1596  ;;  %v1024_v9 = vadd.f32 %v2152_v26, %v989_v32  ;;  %vm691_vm12 = vweird.f32 %v2219_v46 }
 0x12c   : > { %1600 = vrsqrt.f32 %v2227_v39  ;;  %v454_v38 = vmul.f32 %v2225_v18, %v2225_v18  ;;  %v2242_v30 = vpop.eup %1598  ;;  %v819_v56 = vmul.f32 %v2176_v45, %v818_v14  ;;  %v845_v42 = vmul.f32 %v2235_v40, %v2172_v8  ;;  %vm2355_vm6 = vmor %vm690_vm11, %vm691_vm12 }
 0x12d   : > { %v686_v25 = vmul.f32 %v2219_v46, %v685_v57  ;;  %v665_v47 = vmul.f32 %v2242_v30, %v2174_v37  ;;  %1602 = vrsqrt.f32 %v2233_v17  ;;  %v1056_v36 = vpack.c.bf16 %v1025_v2, %v1024_v9 }
 0x12e   : > { %v823_v48 = vsel %vm822_vm7, %v2176_v45, %v819_v56  ;;  %v846_v58 = vmul.f32 %v2235_v40, %v845_v42  ;;  %v510_v60 = vsel %vm274_vm0, %v454_v38, 0.0  ;;  %v2270_v14 = vmul.f32 %v2126_v61, %v956_v23 }
 0x12f   : > { %v687_v27 = vmul.f32 0.5, %v686_v25  ;;  %v542_v53 = vpop.xlane.xlu0 %541  ;;  %v316_v44 = vpop.xlane.xlu1 %315  ;;  %v972_v4 = vmul.f32 %v823_v48, %v1885_v35  ;;  %v666_v22 = vmul.f32 %v2242_v30, %v665_v47  ;;  %1507 = vmatmul.msk.bf16.vlgmr.msra.gmra.mxu0 %vm274_vm0, %v1056_v36  ;;  %1523 = vmatmul.msk.bf16.vlgmr.msra.gmra.mxu1 %vm274_vm0, %v1056_v36  ;;  %vm671_vm10 = vweird.f32 %v2242_v30 }
 0x130   : > { %v592_v10 = vmul.f32 %v542_v53, %v1834_v50  ;;  %v361_v15 = vpop.xlane.xlu2 %360  ;;  %v847_v20 = vmul.f32 0.5, %v846_v58  ;;  %511 = vadd.xlane.f32.xlu1 %v510_v60  ;;  %v1043_v38 = vadd.f32 %v2152_v26, %v1008_v5  ;;  %vm851_vm13 = vweird.f32 %v2235_v40  ;;  %vm672_vm15 = vmor %vm670_vm8, %vm671_vm10 }
 0x131   : > { %v406_v45 = vmul.f32 %v1834_v50, %v361_v15  ;;  %v688_v1 = vsub.f32 1.5, %v687_v27  ;;  %v667_v35 = vmul.f32 0.5, %v666_v22  ;;  %v1007_v9 = vmul.f32 %v2126_v61, %v972_v4  ;;  %vm2319_vm2 = vmor %vm850_vm9, %vm851_vm13 }
 0x132   : > { %v2264_v59 = vpop.eup %1600  ;;  %v2267_v32 = vadd.f32 1e-05, %v592_v10  ;;  %v848_v25 = vsub.f32 1.5, %v847_v20  ;;  %vm840_vm14 = vweird.f32 %v2227_v39  ;;  %v391_v27 = vmul.f32 %v1834_v50, %v316_v44 }
 0x133   : > { %v835_v57 = vmul.f32 %v2264_v59, %v2227_v39  ;;  %v2277_v56 = vpop.eup %1602  ;;  %v668_v42 = vsub.f32 1.5, %v667_v35  ;;  %v2282_v2 = vsub.f32 %v1953_v29, %v406_v45  ;;  %v2290_v47 = vmul.f32 %v2219_v46, %v688_v1 }
 0x134   : > { %1604 = vrsqrt.f32 %v2267_v32  ;;  %v675_v23 = vmul.f32 %v2277_v56, %v2233_v17  ;;  %vm841_vm1 = vweird.f32 %v2264_v59  ;;  %v1042_v58 = vadd.f32 %v2152_v26, %v1007_v9 }
 0x135   : > { %v669_v5 = vmul.f32 %v2242_v30, %v668_v42  ;;  %v836_v48 = vmul.f32 %v2264_v59, %v835_v57  ;;  %v470_v53 = vmul.f32 %v2282_v2, %v2282_v2  ;;  %v849_v22 = vmul.f32 %v2235_v40, %v848_v25  ;;  %vm842_vm4 = vmor %vm840_vm14, %vm841_vm1 }
 0x136   : > { %v676_v29 = vmul.f32 %v2277_v56, %v675_v23  ;;  %v1065_v45 = vpack.c.bf16 %v1043_v38, %v1042_v58  ;;  %v2326_v23 = vsub.f32 %v1949_v24, %v391_v27  ;;  %vm681_vm3 = vweird.f32 %v2277_v56 }
 0x137   : > { %v551_v36 = vpop.xlane.xlu0 %550  ;;  %v545_v4 = vpop.xlane.xlu1 %544  ;;  %v673_v44 = vsel %vm672_vm15, %v2242_v30, %v669_v5  ;;  %v837_v10 = vmul.f32 0.5, %v836_v48  ;;  %v558_v42 = vsel %vm274_vm0, %v470_v53, 0.0  ;;  %v853_v8 = vsel %vm2319_vm2, %v2235_v40, %v849_v22 }
 0x138   : > { %v595_v60 = vmul.f32 %v551_v36, %v1834_v50  ;;  %v497_v37 = vpop.xlane.xlu2 %496  ;;  %v957_v15 = vmul.f32 %v673_v44, %v1906_v51  ;;  %v677_v20 = vmul.f32 0.5, %v676_v29  ;;  %v593_v25 = vmul.f32 %v545_v4, %v1834_v50  ;;  %1516 = vmatmul.msk.bf16.gmra.mxu2 %vm274_vm0, %v1065_v45  ;;  %1532 = vmatmul.msk.bf16.gmra.mxu3 %vm274_vm0, %v1065_v45 }
 0x139   : > { %v577_v1 = vmul.f32 %v497_v37, %v1834_v50  ;;  %v838_v57 = vsub.f32 1.5, %v837_v10  ;;  %559 = vadd.xlane.f32.xlu2 %v558_v42  ;;  %vm680_vm5 = vweird.f32 %v2233_v17  ;;  %v975_v39 = vmul.f32 %v853_v8, %v1909_v52 }
 0x13a   : > { %v2309_v35 = vpop.eup %1604  ;;  %v2311_v9 = vadd.f32 1e-05, %v595_v60  ;;  %v678_v51 = vsub.f32 1.5, %v677_v20  ;;  %v2337_v29 = vadd.f32 1e-05, %v593_v25  ;;  %v992_v58 = vmul.f32 %v2126_v61, %v957_v15  ;;  %vm2365_vm7 = vmor %vm680_vm5, %vm681_vm3 }
 0x13b   : > { %v855_v38 = vmul.f32 %v2309_v35, %v2267_v32  ;;  %v2330_v5 = vadd.f32 1e-05, %v577_v1  ;;  %v839_v48 = vmul.f32 %v2264_v59, %v838_v57  ;;  %v1026_v17 = vadd.f32 %v2152_v26, %v2270_v14 }
 0x13c   : > { %1606 = vrsqrt.f32 %v2311_v9  ;;  %v679_v24 = vmul.f32 %v2277_v56, %v678_v51  ;;  %v1027_v55 = vadd.f32 %v2152_v26, %v992_v58  ;;  %v455_v52 = vmul.f32 %v2326_v23, %v2326_v23 }
 0x13d   : > { %v856_v27 = vmul.f32 %v2309_v35, %v855_v38  ;;  %1608 = vrsqrt.f32 %v2330_v5  ;;  %v843_v40 = vsel %vm842_vm4, %v2264_v59, %v839_v48  ;;  %v693_v14 = vsel %vm2355_vm6, %v2219_v46, %v2290_v47 }
 0x13e   : > { %1610 = vrsqrt.f32 %v2337_v29  ;;  %v974_v53 = vmul.f32 %v843_v40, %v1927_v63  ;;  %v683_v37 = vsel %vm2365_vm7, %v2277_v56, %v679_v24  ;;  %v1057_v1 = vpack.c.bf16 %v1027_v55, %v1026_v17 }
 0x13f   : > { %v857_v4 = vmul.f32 0.5, %v856_v27  ;;  %v500_v59 = vpop.xlane.xlu0 %499  ;;  %v494_v22 = vpop.xlane.xlu1 %493  ;;  %v1010_v47 = vmul.f32 %v2126_v61, %v975_v39  ;;  %v513_v8 = vsel %vm274_vm0, %v455_v52, 0.0  ;;  %v959_v48 = vmul.f32 %v693_v14, %v1899_v0 }
 0x140   : > { %v578_v10 = vmul.f32 %v500_v59, %v1834_v50  ;;  %v370_v60 = vpop.xlane.xlu2 %369  ;;  %v576_v63 = vmul.f32 %v494_v22, %v1834_v50  ;;  %v1009_v46 = vmul.f32 %v2126_v61, %v974_v53  ;;  %1508 = vmatmul.msk.bf16.gmra.mxu0 %vm274_vm0, %v1057_v1  ;;  %1524 = vmatmul.msk.bf16.gmra.mxu1 %vm274_vm0, %v1057_v1  ;;  %vm860_vm8 = vweird.f32 %v2267_v32 }
 0x141   : > { %v409_v15 = vmul.f32 %v1834_v50, %v370_v60  ;;  %v858_v45 = vsub.f32 1.5, %v857_v4  ;;  %v958_v24 = vmul.f32 %v683_v37, %v1924_v62  ;;  %514 = vadd.xlane.f32.xlu2 %v513_v8  ;;  %vm861_vm9 = vweird.f32 %v2309_v35 }
 0x142   : > { %v2382_v20 = vpop.eup %1606  ;;  %v2384_v57 = vadd.f32 1e-05, %v578_v10  ;;  %v2386_v42 = vadd.f32 1e-05, %v576_v63  ;;  %v1044_v62 = vadd.f32 %v2152_v26, %v1009_v46  ;;  %v1045_v36 = vadd.f32 %v2152_v26, %v1010_v47  ;;  %vm2423_vm10 = vmor %vm860_vm8, %vm861_vm9 }
 0x143   : > { %v2388_v25 = vpop.eup %1608  ;;  %v885_v30 = vmul.f32 %v2382_v20, %v2311_v9  ;;  %v2402_v38 = vsub.f32 %v1992_v31, %v409_v15  ;;  %v859_v40 = vmul.f32 %v2309_v35, %v858_v45  ;;  %v993_v60 = vmul.f32 %v2126_v61, %v958_v24 }
 0x144   : > { %v2394_v56 = vpop.eup %1610  ;;  %v705_v51 = vmul.f32 %v2388_v25, %v2330_v5  ;;  %1612 = vrsqrt.f32 %v2384_v57  ;;  %v1066_v55 = vpack.c.bf16 %v1045_v36, %v1044_v62  ;;  %vm870_vm11 = vweird.f32 %v2337_v29 }
 0x145   : > { %v865_v27 = vmul.f32 %v2394_v56, %v2337_v29  ;;  %1614 = vrsqrt.f32 %v2386_v42  ;;  %v886_v31 = vmul.f32 %v2382_v20, %v885_v30  ;;  %v473_v4 = vmul.f32 %v2402_v38, %v2402_v38 }
 0x146   : > { %v706_v58 = vmul.f32 %v2388_v25, %v705_v51  ;;  %v863_v63 = vsel %vm2423_vm10, %v2309_v35, %v859_v40  ;;  %vm871_vm12 = vweird.f32 %v2394_v56  ;;  %v994_v45 = vmul.f32 %v2126_v61, %v959_v48 }
 0x147   : > { %v866_v0 = vmul.f32 %v2394_v56, %v865_v27  ;;  %v367_v39 = vpop.xlane.xlu1 %366  ;;  %v567_v32 = vsel %vm274_vm0, %v473_v4, 0.0  ;;  %v887_v37 = vmul.f32 0.5, %v886_v31  ;;  %vm711_vm13 = vweird.f32 %v2388_v25  ;;  %v322_v24 = vpop.xlane.xlu0 %321  ;;  %vm872_vm1 = vmor %vm870_vm11, %vm871_vm12 }
 0x148   : > { %v707_v53 = vmul.f32 0.5, %v706_v58  ;;  %v548_v17 = vpop.xlane.xlu2 %547  ;;  %v408_v59 = vmul.f32 %v1834_v50, %v367_v39  ;;  %1517 = vmatmul.msk.bf16.gmra.mxu2 %vm274_vm0, %v1066_v55  ;;  %1533 = vmatmul.msk.bf16.gmra.mxu3 %vm274_vm0, %v1066_v55  ;;  %v1028_v48 = vadd.f32 %v2152_v26, %v993_v60  ;;  %v976_v27 = vmul.f32 %v863_v63, %v1938_v13 }
 0x149   : > { %v867_v44 = vmul.f32 0.5, %v866_v0  ;;  %v594_v10 = vmul.f32 %v548_v17, %v1834_v50  ;;  %568 = vadd.xlane.f32.xlu1 %v567_v32  ;;  %vm890_vm14 = vweird.f32 %v2311_v9  ;;  %vm710_vm15 = vweird.f32 %v2330_v5 }
 0x14a   : > { %v2429_v52 = vpop.eup %1612  ;;  %v708_v14 = vsub.f32 1.5, %v707_v53  ;;  %v2452_v8 = vsub.f32 %v2003_v11, %v408_v59  ;;  %v888_v40 = vsub.f32 1.5, %v887_v37  ;;  %vm2465_vm2 = vmor %vm710_vm15, %vm711_vm13  ;;  %v1029_v5 = vadd.f32 %v2152_v26, %v994_v45 }
 0x14b   : > { %v868_v15 = vsub.f32 1.5, %v867_v44  ;;  %v2440_v1 = vpop.eup %1614  ;;  %v715_v35 = vmul.f32 %v2429_v52, %v2384_v57  ;;  %v2446_v46 = vadd.f32 1e-05, %v594_v10  ;;  %v393_v36 = vmul.f32 %v1834_v50, %v322_v24 }
 0x14c   : > { %v709_v30 = vmul.f32 %v2388_v25, %v708_v14  ;;  %v695_v51 = vmul.f32 %v2440_v1, %v2386_v42  ;;  %v1058_v4 = vpack.c.bf16 %v1029_v5, %v1028_v48  ;;  %v472_v17 = vmul.f32 %v2452_v8, %v2452_v8 }
 0x14d   : > { %v869_v47 = vmul.f32 %v2394_v56, %v868_v15  ;;  %1616 = vrsqrt.f32 %v2446_v46  ;;  %v716_v62 = vmul.f32 %v2429_v52, %v715_v35  ;;  %v2482_v59 = vsub.f32 %v2008_v6, %v393_v36 }
 0x14e   : > { %v696_v58 = vmul.f32 %v2440_v1, %v695_v51  ;;  %v713_v29 = vsel %vm2465_vm2, %v2388_v25, %v709_v30  ;;  %v1011_v25 = vmul.f32 %v2126_v61, %v976_v27  ;;  %vm701_vm3 = vweird.f32 %v2440_v1 }
 0x14f   : > { %v873_v13 = vsel %vm872_vm1, %v2394_v56, %v869_v47  ;;  %v503_v31 = vpop.xlane.xlu1 %502  ;;  %v564_v10 = vsel %vm274_vm0, %v472_v17, 0.0  ;;  %vm891_vm4 = vweird.f32 %v2382_v20  ;;  %vm700_vm5 = vweird.f32 %v2386_v42 }
 0x150   : > { %v977_v0 = vmul.f32 %v873_v13, %v1960_v12  ;;  %v319_v39 = vpop.xlane.xlu2 %318  ;;  %v697_v53 = vmul.f32 0.5, %v696_v58  ;;  %v579_v22 = vmul.f32 %v503_v31, %v1834_v50  ;;  %1509 = vmatmul.msk.bf16.gmra.mxu0 %vm274_vm0, %v1058_v4  ;;  %1525 = vmatmul.msk.bf16.gmra.mxu1 %vm274_vm0, %v1058_v4  ;;  %v889_v14 = vmul.f32 %v2382_v20, %v888_v40  ;;  %vm702_vm6 = vmor %vm700_vm5, %vm701_vm3 }
 0x151   : > { %v392_v56 = vmul.f32 %v1834_v50, %v319_v39  ;;  %565 = vadd.xlane.f32.xlu0 %v564_v10  ;;  %v1046_v37 = vadd.f32 %v2152_v26, %v1011_v25  ;;  %v961_v15 = vmul.f32 %v713_v29, %v1967_v41  ;;  %v717_v42 = vmul.f32 0.5, %v716_v62  ;;  %vm2516_vm7 = vmor %vm890_vm14, %vm891_vm4 }
 0x152   : > { %v1012_v12 = vmul.f32 %v2126_v61, %v977_v0  ;;  %v698_v44 = vsub.f32 1.5, %v697_v53  ;;  %v2496_v6 = vadd.f32 1e-05, %v579_v22  ;;  %v457_v45 = vmul.f32 %v2482_v59, %v2482_v59 }
 0x153   : > { %v2489_v55 = vsub.f32 %v2023_v28, %v392_v56  ;;  %v1617_v60 = vpop.eup %1616  ;;  %v718_v29 = vsub.f32 1.5, %v717_v42  ;;  %vm880_vm9 = vweird.f32 %v2446_v46  ;;  %vm720_vm10 = vweird.f32 %v2384_v57 }
 0x154   : > { %v1047_v63 = vadd.f32 %v2152_v26, %v1012_v12  ;;  %v699_v28 = vmul.f32 %v2440_v1, %v698_v44  ;;  %v875_v32 = vmul.f32 %v1617_v60, %v2446_v46  ;;  %1618 = vrsqrt.f32 %v2496_v6 }
 0x155   : > { %v456_v51 = vmul.f32 %v2489_v55, %v2489_v55  ;;  %v519_v9 = vsel %vm274_vm0, %v457_v45, 0.0  ;;  %vm881_vm8 = vweird.f32 %v1617_v60  ;;  %v719_v17 = vmul.f32 %v2429_v52, %v718_v29 }
 0x156   : > { %v703_v30 = vsel %vm702_vm6, %v2440_v1, %v699_v28  ;;  %v876_v35 = vmul.f32 %v1617_v60, %v875_v32  ;;  %v1067_v47 = vpack.c.bf16 %v1047_v63, %v1046_v37  ;;  %v893_v1 = vsel %vm2516_vm7, %v2382_v20, %v889_v14  ;;  %vm882_vm11 = vmor %vm880_vm9, %vm881_vm8 }
 0x157   : > { %v554_v48 = vpop.xlane.xlu1 %553  ;;  %v960_v24 = vmul.f32 %v703_v30, %v1982_v54  ;;  %v516_v58 = vsel %vm274_vm0, %v456_v51, 0.0  ;;  %v996_v54 = vmul.f32 %v2126_v61, %v961_v15  ;;  %v979_v36 = vmul.f32 %v893_v1, %v1956_v33 }
 0x158   : > { %v557_v27 = vpop.xlane.xlu2 %556  ;;  %v596_v40 = vmul.f32 %v554_v48, %v1834_v50  ;;  %v877_v11 = vmul.f32 0.5, %v876_v35  ;;  %517 = vadd.xlane.f32.xlu2 %v516_v58  ;;  %1518 = vmatmul.msk.bf16.gmra.mxu2 %vm274_vm0, %v1067_v47  ;;  %vm721_vm12 = vweird.f32 %v2429_v52  ;;  %vm730_vm13 = vweird.f32 %v2496_v6 }
 0x159   : > { %v597_v13 = vmul.f32 %v557_v27, %v1834_v50  ;;  %v995_v31 = vmul.f32 %v2126_v61, %v960_v24  ;;  %1534 = vmatmul.msk.bf16.gmra.mxu3 %vm274_vm0, %v1067_v47  ;;  %520 = vadd.xlane.f32.xlu0 %v519_v9  ;;  %v1031_v56 = vadd.f32 %v2152_v26, %v996_v54  ;;  %vm722_vm15 = vmor %vm720_vm10, %vm721_vm12 }
 0x15a   : > { %v628_v5 = vadd.f32 1e-05, %v596_v40  ;;  %v878_v0 = vsub.f32 1.5, %v877_v11  ;;  %v1619_v62 = vpop.eup %1618  ;;  %v1014_v46 = vmul.f32 %v2126_v61, %v979_v36  ;;  %v723_v14 = vsel %vm722_vm15, %v2429_v52, %v719_v17 }
 0x15b   : > { %v629_v20 = vadd.f32 1e-05, %v597_v13  ;;  %v1030_v39 = vadd.f32 %v2152_v26, %v995_v31  ;;  %v725_v4 = vmul.f32 %v1619_v62, %v2496_v6  ;;  %vm731_vm14 = vweird.f32 %v1619_v62 }
 0x15c   : > { %1620 = vrsqrt.f32 %v628_v5  ;;  %v879_v53 = vmul.f32 %v1617_v60, %v878_v0  ;;  %vm732_vm1 = vmor %vm730_vm13, %vm731_vm14  ;;  %v1049_v15 = vadd.f32 %v2152_v26, %v1014_v46  ;;  %v962_v42 = vmul.f32 %v723_v14, %v1978_v49 }
 0x15d   : > { %1622 = vrsqrt.f32 %v629_v20  ;;  %v726_v22 = vmul.f32 %v1619_v62, %v725_v4  ;;  %v1059_v12 = vpack.c.bf16 %v1031_v56, %v1030_v39  ;;  %vm900_vm2 = vweird.f32 %v628_v5 }
 0x15e   : > { %v883_v33 = vsel %vm882_vm11, %v1617_v60, %v879_v53  ;;  %vm910_vm4 = vweird.f32 %v629_v20  ;;  %v997_v24 = vmul.f32 %v2126_v61, %v962_v42  ;;  %vm1354_vm14 = vcmask 1043456  }
 0x15f   : > { %v978_v25 = vmul.f32 %v883_v33, %v1999_v3  ;;  %v727_v44 = vmul.f32 0.5, %v726_v22  ;;  %vm1355_vm15 = vcmask 523268  }
 0x160   : > { %1510 = vmatmul.msk.bf16.gmra.mxu0 %vm274_vm0, %v1059_v12  ;;  %1526 = vmatmul.msk.bf16.gmra.mxu1 %vm274_vm0, %v1059_v12  ;;  %v1032_v58 = vadd.f32 %v2152_v26, %v997_v24 }
 0x161   : > { %v1013_v57 = vmul.f32 %v2126_v61, %v978_v25  ;;  %v728_v28 = vsub.f32 1.5, %v727_v44 }
 0x162   : > { %v1621_v10 = vpop.eup %1620 }
 0x163   : > { %v1623_v63 = vpop.eup %1622  ;;  %v895_v32 = vmul.f32 %v1621_v10, %v628_v5  ;;  %v1048_v3 = vadd.f32 %v2152_v26, %v1013_v57  ;;  %v729_v6 = vmul.f32 %v1619_v62, %v728_v28  ;;  %vm901_vm3 = vweird.f32 %v1621_v10 }
 0x164   : > { %v905_v60 = vmul.f32 %v1623_v63, %v629_v20  ;;  %vm911_vm5 = vweird.f32 %v1623_v63  ;;  %vm902_vm6 = vmor %vm900_vm2, %vm901_vm3 }
 0x165   : > { %v896_v37 = vmul.f32 %v1621_v10, %v895_v32  ;;  %v733_v30 = vsel %vm732_vm1, %v1619_v62, %v729_v6  ;;  %v1068_v35 = vpack.c.bf16 %v1049_v15, %v1048_v3  ;;  %vm912_vm7 = vmor %vm910_vm4, %vm911_vm5 }
 0x166   : > { %v906_v45 = vmul.f32 %v1623_v63, %v905_v60  ;;  %v963_v47 = vmul.f32 %v733_v30, %v2011_v7  ;;  %vm2591_vm1 = vmor %vm1355_vm15, %vm1354_vm14 }
 0x167   : > { %v897_v52 = vmul.f32 0.5, %v896_v37 }
 0x168   : > { %v907_v51 = vmul.f32 0.5, %v906_v45  ;;  %v998_v27 = vmul.f32 %v2126_v61, %v963_v47  ;;  %1519 = vmatmul.msk.bf16.gmra.mxu2 %vm274_vm0, %v1068_v35 }
 0x169   : > { %v898_v48 = vsub.f32 1.5, %v897_v52  ;;  %1535 = vmatmul.msk.bf16.gmra.mxu3 %vm274_vm0, %v1068_v35 }
 0x16a   : > { %v908_v41 = vsub.f32 1.5, %v907_v51  ;;  %v1033_v1 = vadd.f32 %v2152_v26, %v998_v27 }
 0x16b   : > { %v899_v49 = vmul.f32 %v1621_v10, %v898_v48 }
 0x16c   : > { %v909_v40 = vmul.f32 %v1623_v63, %v908_v41  ;;  %v1060_v5 = vpack.c.bf16 %v1033_v1, %v1032_v58 }
 0x16d   : > { %v903_v7 = vsel %vm902_vm6, %v1621_v10, %v899_v49 }
 0x16e   : > { %v913_v11 = vsel %vm912_vm7, %v1623_v63, %v909_v40  ;;  %v980_v13 = vmul.f32 %v903_v7, %v2026_v34 }
 0x16f   : > { %v981_v9 = vmul.f32 %v913_v11, %v2032_v43 }
 0x170   : > { %v1015_v31 = vmul.f32 %v2126_v61, %v980_v13  ;;  %1511 = vmatmul.msk.bf16.gmra.mxu0 %vm274_vm0, %v1060_v5  ;;  %1527 = vmatmul.msk.bf16.gmra.mxu1 %vm274_vm0, %v1060_v5 }
 0x171   : > { %v1016_v54 = vmul.f32 %v2126_v61, %v981_v9 }
 0x172   : > { %v1050_v29 = vadd.f32 %v2152_v26, %v1015_v31 }
 0x173   : > { %v1051_v0 = vadd.f32 %v2152_v26, %v1016_v54 }
 0x175   : > { %v1069_v20 = vpack.c.bf16 %v1051_v0, %v1050_v29 }
 0x178   : > { %1520 = vmatmul.msk.bf16.gmra.mxu2 %vm274_vm0, %v1069_v20 }
 0x179   : > { %1536 = vmatmul.msk.bf16.gmra.mxu3 %vm274_vm0, %v1069_v20 }
 0x18b   : > { %v509_v34 = vpop.xlane.xlu1 %508 }
 0x18c   : > { %v581_v43 = vmul.f32 %v509_v34, %v1834_v50 }
 0x18e   : > { %v613_v62 = vadd.f32 1e-05, %v581_v43 }
 0x190   : > { %1624 = vrsqrt.f32 %v613_v62  ;;  %vm750_vm9 = vweird.f32 %v613_v62 }
 0x192   : > { %v506_v36 = vpop.xlane.xlu0 %505 }
 0x193   : > { %v580_v39 = vmul.f32 %v506_v36, %v1834_v50 }
 0x195   : > { %v612_v53 = vadd.f32 1e-05, %v580_v39 }
 0x196   : > { %v1625_v4 = vpop.eup %1624 }
 0x197   : > { %v745_v56 = vmul.f32 %v1625_v4, %v613_v62  ;;  %1626 = vrsqrt.f32 %v612_v53  ;;  %vm751_vm8 = vweird.f32 %v1625_v4  ;;  %vm740_vm12 = vweird.f32 %v612_v53 }
 0x198   : > { %vm752_vm10 = vmor %vm750_vm9, %vm751_vm8 }
 0x199   : > { %v746_v17 = vmul.f32 %v1625_v4, %v745_v56 }
 0x19a   : > { %v563_v22 = vpop.xlane.xlu0 %562 }
 0x19b   : > { %v747_v33 = vmul.f32 0.5, %v746_v17  ;;  %v599_v25 = vmul.f32 %v563_v22, %v1834_v50 }
 0x19d   : > { %v1627_v12 = vpop.eup %1626  ;;  %v748_v44 = vsub.f32 1.5, %v747_v33  ;;  %v2570_v10 = vadd.f32 1e-05, %v599_v25 }
 0x19e   : > { %v735_v46 = vmul.f32 %v1627_v12, %v612_v53  ;;  %vm741_vm11 = vweird.f32 %v1627_v12 }
 0x19f   : > { %v749_v57 = vmul.f32 %v1625_v4, %v748_v44  ;;  %1628 = vrsqrt.f32 %v2570_v10  ;;  %vm742_vm13 = vmor %vm740_vm12, %vm741_vm11  ;;  %vm930_vm3 = vweird.f32 %v2570_v10 }
 0x1a0   : > { %v736_v63 = vmul.f32 %v1627_v12, %v735_v46 }
 0x1a1   : > { %v753_v14 = vsel %vm752_vm10, %v1625_v4, %v749_v57 }
 0x1a2   : > { %v737_v28 = vmul.f32 0.5, %v736_v63  ;;  %v965_v6 = vmul.f32 %v753_v14, %v2091_v19 }
 0x1a3   : > { %v512_v32 = vpop.xlane.xlu1 %511 }
 0x1a4   : > { %v738_v60 = vsub.f32 1.5, %v737_v28  ;;  %v582_v3 = vmul.f32 %v512_v32, %v1834_v50  ;;  %v1000_v35 = vmul.f32 %v2126_v61, %v965_v6 }
 0x1a5   : > { %v2575_v37 = vpop.eup %1628 }
 0x1a6   : > { %v739_v15 = vmul.f32 %v1627_v12, %v738_v60  ;;  %v2577_v42 = vadd.f32 1e-05, %v582_v3  ;;  %v925_v30 = vmul.f32 %v2575_v37, %v2570_v10  ;;  %v1035_v7 = vadd.f32 %v2152_v26, %v1000_v35  ;;  %v2643_v35 = vld [vmem:[%s2785_s1] ss:$0 sm:$0xff] }
 0x1a7   : > { %vm931_vm2 = vweird.f32 %v2575_v37 }
 0x1a8   : > { %v743_v45 = vsel %vm742_vm13, %v1627_v12, %v739_v15  ;;  %1630 = vrsqrt.f32 %v2577_v42  ;;  %vm932_vm4 = vmor %vm930_vm3, %vm931_vm2  ;;  %vm760_vm5 = vweird.f32 %v2577_v42 }
 0x1a9   : > { %v964_v52 = vmul.f32 %v743_v45, %v2118_v21  ;;  %v926_v21 = vmul.f32 %v2575_v37, %v925_v30 }
 0x1ab   : > { %v1193_v19 = vpop.f32.mrf.mxu2  ;;  %v1282_v47 = vpop.f32.mrf.mxu3  ;;  %v999_v41 = vmul.f32 %v2126_v61, %v964_v52  ;;  %v927_v58 = vmul.f32 0.5, %v926_v21 }
 0x1ac   : > { %v1338_v48 = vpack.c.bf16 %v1282_v47, %v1193_v19  ;;  %v1153_v24 = vpop.f32.mrf.mxu0  ;;  %v1242_v27 = vpop.f32.mrf.mxu1 }
 0x1ad   : > { %v560_v49 = vpop.xlane.xlu2 %559  ;;  %v1322_v40 = vpack.c.bf16 %v1242_v27, %v1153_v24  ;;  %v1034_v1 = vadd.f32 %v2152_v26, %v999_v41  ;;  %v928_v0 = vsub.f32 1.5, %v927_v58 }
 0x1ae   : > { %1373 = vst.msk [vmem:[%s2589_s24 + $0x80] sm:$0xff] %vm2591_vm1, %v1338_v48  ;;  %v2602_v11 = vpop.eup %1630  ;;  %v598_v13 = vmul.f32 %v560_v49, %v1834_v50 }
 0x1af   : > { %1357 = vst.msk [vmem:[%s2589_s24] sm:$0xff] %vm2591_vm1, %v1322_v40  ;;  %v1061_v61 = vpack.c.bf16 %v1035_v7, %v1034_v1  ;;  %v755_v9 = vmul.f32 %v2602_v11, %v2577_v42  ;;  %v929_v4 = vmul.f32 %v2575_v37, %v928_v0  ;;  %vm761_vm7 = vweird.f32 %v2602_v11 }
 0x1b0   : > { %v630_v5 = vadd.f32 1e-05, %v598_v13  ;;  %vm762_vm10 = vmor %vm760_vm5, %vm761_vm7 }
 0x1b1   : > { %1512 = vmatmul.msk.bf16.gmra.mxu0 %vm274_vm0, %v1061_v61  ;;  %1528 = vmatmul.msk.bf16.gmra.mxu1 %vm274_vm0, %v1061_v61  ;;  %v756_v20 = vmul.f32 %v2602_v11, %v755_v9  ;;  %v933_v25 = vsel %vm932_vm4, %v2575_v37, %v929_v4 }
 0x1b2   : > { %1632 = vrsqrt.f32 %v630_v5  ;;  %v983_v32 = vmul.f32 %v933_v25, %v2136_v16  ;;  %vm920_vm8 = vweird.f32 %v630_v5 }
 0x1b3   : > { %v1195_v31 = vpop.f32.mrf.mxu2  ;;  %v1284_v54 = vpop.f32.mrf.mxu3  ;;  %v757_v56 = vmul.f32 0.5, %v756_v20 }
 0x1b4   : > { %v1339_v29 = vpack.c.bf16 %v1284_v54, %v1195_v31  ;;  %v1155_v34 = vpop.f32.mrf.mxu0  ;;  %v1244_v43 = vpop.f32.mrf.mxu1  ;;  %v1018_v19 = vmul.f32 %v2643_v35, %v983_v32 }
 0x1b5   : > { %v1323_v62 = vpack.c.bf16 %v1244_v43, %v1155_v34  ;;  %v515_v36 = vpop.xlane.xlu2 %514  ;;  %v758_v12 = vsub.f32 1.5, %v757_v56 }
 0x1b6   : > { %1374 = vst.msk [vmem:[%s2589_s24 + $0x88] sm:$0xff] %vm2591_vm1, %v1339_v29  ;;  %v583_v39 = vmul.f32 %v515_v36, %v1834_v50 }
 0x1b7   : > { %1358 = vst.msk [vmem:[%s2589_s24 + $0x8] sm:$0xff] %vm2591_vm1, %v1323_v62  ;;  %v759_v6 = vmul.f32 %v2602_v11, %v758_v12 }
 0x1b8   : > { %v1633_v53 = vpop.eup %1632  ;;  %v615_v33 = vadd.f32 1e-05, %v583_v39 }
 0x1b9   : > { %v915_v17 = vmul.f32 %v1633_v53, %v630_v5  ;;  %vm921_vm6 = vweird.f32 %v1633_v53  ;;  %v763_v47 = vsel %vm762_vm10, %v2602_v11, %v759_v6  ;;  %v2658_v5 = vld [vmem:[%s2786_s2] ss:$0 sm:$0xff] }
 0x1ba   : > { %1634 = vrsqrt.f32 %v615_v33  ;;  %vm922_vm9 = vmor %vm920_vm8, %vm921_vm6  ;;  %v966_v1 = vmul.f32 %v763_v47, %v2225_v18  ;;  %vm770_vm12 = vweird.f32 %v615_v33 }
 0x1bb   : > { %v916_v22 = vmul.f32 %v1633_v53, %v915_v17  ;;  %v1198_v44 = vpop.f32.mrf.mxu2  ;;  %v1287_v46 = vpop.f32.mrf.mxu3 }
 0x1bc   : > { %v1340_v63 = vpack.c.bf16 %v1287_v46, %v1198_v44  ;;  %v569_v14 = vpop.xlane.xlu1 %568  ;;  %v1001_v39 = vmul.f32 %v2643_v35, %v966_v1 }
 0x1bd   : > { %v917_v57 = vmul.f32 0.5, %v916_v22  ;;  %v601_v28 = vmul.f32 %v569_v14, %v1834_v50  ;;  %v1158_v60 = vpop.f32.mrf.mxu0  ;;  %v1247_v3 = vpop.f32.mrf.mxu1 }
 0x1be   : > { %1375 = vst.msk [vmem:[%s2589_s24 + $0x90] sm:$0xff] %vm2591_vm1, %v1340_v63  ;;  %v1324_v15 = vpack.c.bf16 %v1247_v3, %v1158_v60 }
 0x1bf   : > { %v918_v10 = vsub.f32 1.5, %v917_v57  ;;  %v2632_v37 = vadd.f32 1e-05, %v601_v28 }
 0x1c0   : > { %v1635_v45 = vpop.eup %1634  ;;  %1359 = vst.msk [vmem:[%s2589_s24 + $0x10] sm:$0xff] %vm2591_vm1, %v1324_v15 }
 0x1c1   : > { %v919_v30 = vmul.f32 %v1633_v53, %v918_v10  ;;  %v765_v16 = vmul.f32 %v1635_v45, %v615_v33  ;;  %1636 = vrsqrt.f32 %v2632_v37  ;;  %vm771_vm11 = vweird.f32 %v1635_v45 }
 0x1c2   : > { %vm772_vm13 = vmor %vm770_vm12, %vm771_vm11  ;;  %vm950_vm15 = vweird.f32 %v2632_v37 }
 0x1c3   : > { %v923_v52 = vsel %vm922_vm9, %v1633_v53, %v919_v30  ;;  %v766_v41 = vmul.f32 %v1635_v45, %v765_v16  ;;  %v1200_v21 = vpop.f32.mrf.mxu2  ;;  %v1289_v24 = vpop.f32.mrf.mxu3 }
 0x1c4   : > { %v982_v48 = vmul.f32 %v923_v52, %v2282_v2  ;;  %v1341_v27 = vpack.c.bf16 %v1289_v24, %v1200_v21  ;;  %v566_v40 = vpop.xlane.xlu0 %565  ;;  %v1053_v2 = vadd.f32 %v2152_v26, %v1018_v19 }
 0x1c5   : > { %v767_v49 = vmul.f32 0.5, %v766_v41  ;;  %v600_v7 = vmul.f32 %v566_v40, %v1834_v50  ;;  %v1160_v13 = vpop.f32.mrf.mxu0  ;;  %v1249_v11 = vpop.f32.mrf.mxu1 }
 0x1c6   : > { %v1017_v42 = vmul.f32 %v2643_v35, %v982_v48  ;;  %1376 = vst.msk [vmem:[%s2589_s24 + $0x98] sm:$0xff] %vm2591_vm1, %v1341_v27  ;;  %v1325_v9 = vpack.c.bf16 %v1249_v11, %v1160_v13 }
 0x1c7   : > { %v1637_v61 = vpop.eup %1636  ;;  %v768_v58 = vsub.f32 1.5, %v767_v49  ;;  %v2662_v54 = vadd.f32 1e-05, %v600_v7 }
 0x1c8   : > { %v1052_v18 = vadd.f32 %v2658_v5, %v1017_v42  ;;  %v945_v31 = vmul.f32 %v1637_v61, %v2632_v37  ;;  %1360 = vst.msk [vmem:[%s2589_s24 + $0x18] sm:$0xff] %vm2591_vm1, %v1325_v9  ;;  %vm951_vm14 = vweird.f32 %v1637_v61 }
 0x1c9   : > { %v769_v29 = vmul.f32 %v1635_v45, %v768_v58  ;;  %1638 = vrsqrt.f32 %v2662_v54  ;;  %vm952_vm2 = vmor %vm950_vm15, %vm951_vm14  ;;  %vm940_vm4 = vweird.f32 %v2662_v54 }
 0x1ca   : > { %v1070_v26 = vpack.c.bf16 %v1053_v2, %v1052_v18  ;;  %v946_v0 = vmul.f32 %v1637_v61, %v945_v31 }
 0x1cb   : > { %v518_v20 = vpop.xlane.xlu2 %517  ;;  %v773_v34 = vsel %vm772_vm13, %v1635_v45, %v769_v29  ;;  %v1203_v43 = vpop.f32.mrf.mxu2 }
 0x1cc   : > { %1521 = vmatmul.msk.bf16.gmra.mxu2 %vm274_vm0, %v1070_v26  ;;  %v1292_v62 = vpop.f32.mrf.mxu3  ;;  %1537 = vmatmul.msk.bf16.gmra.mxu3 %vm274_vm0, %v1070_v26  ;;  %v584_v36 = vmul.f32 %v518_v20, %v1834_v50  ;;  %v967_v53 = vmul.f32 %v773_v34, %v2326_v23  ;;  %v947_v4 = vmul.f32 0.5, %v946_v0  ;;  %v521_v33 = vpop.xlane.xlu0 %520  ;;  %v1036_v23 = vadd.f32 %v2658_v5, %v1001_v39 }
 0x1cd   : > { %v1342_v56 = vpack.c.bf16 %v1292_v62, %v1203_v43  ;;  %v585_v25 = vmul.f32 %v521_v33, %v1834_v50  ;;  %v1163_v12 = vpop.f32.mrf.mxu0  ;;  %v1252_v44 = vpop.f32.mrf.mxu1 }
 0x1ce   : > { %v2673_v17 = vadd.f32 1e-05, %v584_v36  ;;  %v948_v22 = vsub.f32 1.5, %v947_v4  ;;  %v1002_v46 = vmul.f32 %v2643_v35, %v967_v53  ;;  %v1326_v57 = vpack.c.bf16 %v1252_v44, %v1163_v12 }
 0x1cf   : > { %1377 = vst.msk [vmem:[%s2589_s24 + $0xa0] sm:$0xff] %vm2591_vm1, %v1342_v56  ;;  %v1639_v63 = vpop.eup %1638  ;;  %v617_v28 = vadd.f32 1e-05, %v585_v25 }
 0x1d0   : > { %1640 = vrsqrt.f32 %v2673_v17  ;;  %v949_v14 = vmul.f32 %v1637_v61, %v948_v22  ;;  %v1037_v32 = vadd.f32 %v2658_v5, %v1002_v46  ;;  %v935_v10 = vmul.f32 %v1639_v63, %v2662_v54  ;;  %1361 = vst.msk [vmem:[%s2589_s24 + $0x20] sm:$0xff] %vm2591_vm1, %v1326_v57 }
 0x1d1   : > { %1642 = vrsqrt.f32 %v617_v28  ;;  %vm941_vm3 = vweird.f32 %v1639_v63  ;;  %vm780_vm7 = vweird.f32 %v2673_v17  ;;  %vm790_vm10 = vweird.f32 %v617_v28 }
 0x1d2   : > { %v1062_v50 = vpack.c.bf16 %v1037_v32, %v1036_v23  ;;  %v936_v60 = vmul.f32 %v1639_v63, %v935_v10  ;;  %v953_v15 = vsel %vm952_vm2, %v1637_v61, %v949_v14  ;;  %vm942_vm5 = vmor %vm940_vm4, %vm941_vm3 }
 0x1d3   : > { %v1205_v3 = vpop.f32.mrf.mxu2  ;;  %v985_v47 = vmul.f32 %v953_v15, %v2402_v38 }
 0x1d4   : > { %v1294_v6 = vpop.f32.mrf.mxu3  ;;  %1513 = vmatmul.msk.bf16.gmra.mxu0 %vm274_vm0, %v1062_v50  ;;  %1529 = vmatmul.msk.bf16.gmra.mxu1 %vm274_vm0, %v1062_v50  ;;  %v937_v16 = vmul.f32 0.5, %v936_v60 }
 0x1d5   : > { %v1343_v45 = vpack.c.bf16 %v1294_v6, %v1205_v3  ;;  %v1165_v37 = vpop.f32.mrf.mxu0  ;;  %v1254_v19 = vpop.f32.mrf.mxu1  ;;  %v1020_v38 = vmul.f32 %v2643_v35, %v985_v47 }
 0x1d6   : > { %v1641_v30 = vpop.eup %1640  ;;  %v938_v48 = vsub.f32 1.5, %v937_v16  ;;  %v1327_v41 = vpack.c.bf16 %v1254_v19, %v1165_v37 }
 0x1d7   : > { %v775_v52 = vmul.f32 %v1641_v30, %v2673_v17  ;;  %1378 = vst.msk [vmem:[%s2589_s24 + $0xa8] sm:$0xff] %vm2591_vm1, %v1343_v45  ;;  %v1643_v21 = vpop.eup %1642  ;;  %vm781_vm6 = vweird.f32 %v1641_v30  ;;  %v1055_v20 = vadd.f32 %v2658_v5, %v1020_v38 }
 0x1d8   : > { %v939_v27 = vmul.f32 %v1639_v63, %v938_v48  ;;  %v785_v49 = vmul.f32 %v1643_v21, %v617_v28  ;;  %1362 = vst.msk [vmem:[%s2589_s24 + $0x28] sm:$0xff] %vm2591_vm1, %v1327_v41  ;;  %vm782_vm8 = vmor %vm780_vm7, %vm781_vm6  ;;  %vm791_vm9 = vweird.f32 %v1643_v21 }
 0x1d9   : > { %v776_v24 = vmul.f32 %v1641_v30, %v775_v52  ;;  %vm792_vm11 = vmor %vm790_vm10, %vm791_vm9 }
 0x1da   : > { %v943_v42 = vsel %vm942_vm5, %v1639_v63, %v939_v27  ;;  %v786_v1 = vmul.f32 %v1643_v21, %v785_v49 }
 0x1db   : > { %v777_v40 = vmul.f32 0.5, %v776_v24  ;;  %v1208_v7 = vpop.f32.mrf.mxu2  ;;  %v984_v11 = vmul.f32 %v943_v42, %v2452_v8 }
 0x1dc   : > { %v1297_v13 = vpop.f32.mrf.mxu3  ;;  %v787_v58 = vmul.f32 0.5, %v786_v1 }
 0x1dd   : > { %v778_v2 = vsub.f32 1.5, %v777_v40  ;;  %v1344_v61 = vpack.c.bf16 %v1297_v13, %v1208_v7  ;;  %v1168_v18 = vpop.f32.mrf.mxu0  ;;  %v1257_v31 = vpop.f32.mrf.mxu1  ;;  %v1019_v54 = vmul.f32 %v2643_v35, %v984_v11 }
 0x1de   : > { %v788_v29 = vsub.f32 1.5, %v787_v58  ;;  %v1328_v26 = vpack.c.bf16 %v1257_v31, %v1168_v18 }
 0x1df   : > { %v779_v9 = vmul.f32 %v1641_v30, %v778_v2  ;;  %1379 = vst.msk [vmem:[%s2589_s24 + $0xb0] sm:$0xff] %vm2591_vm1, %v1344_v61  ;;  %v1054_v0 = vadd.f32 %v2658_v5, %v1019_v54 }
 0x1e0   : > { %v789_v43 = vmul.f32 %v1643_v21, %v788_v29  ;;  %1363 = vst.msk [vmem:[%s2589_s24 + $0x30] sm:$0xff] %vm2591_vm1, %v1328_v26 }
 0x1e1   : > { %v783_v8 = vsel %vm782_vm8, %v1641_v30, %v779_v9  ;;  %v1071_v62 = vpack.c.bf16 %v1055_v20, %v1054_v0 }
 0x1e2   : > { %v968_v34 = vmul.f32 %v783_v8, %v2489_v55  ;;  %v793_v36 = vsel %vm792_vm11, %v1643_v21, %v789_v43 }
 0x1e3   : > { %v1210_v39 = vpop.f32.mrf.mxu2  ;;  %v969_v56 = vmul.f32 %v793_v36, %v2482_v59  ;;  %1522 = vmatmul.msk.bf16.gmra.mxu2 %vm274_vm0, %v1071_v62  ;;  %1538 = vmatmul.msk.bf16.gmra.mxu3 %vm274_vm0, %v1071_v62 }
 0x1e4   : > { %v1299_v53 = vpop.f32.mrf.mxu3  ;;  %v1003_v4 = vmul.f32 %v2643_v35, %v968_v34 }
 0x1e5   : > { %v1345_v17 = vpack.c.bf16 %v1299_v53, %v1210_v39  ;;  %v1170_v55 = vpop.f32.mrf.mxu0  ;;  %v1259_v33 = vpop.f32.mrf.mxu1  ;;  %v1004_v22 = vmul.f32 %v2643_v35, %v969_v56 }
 0x1e6   : > { %v1038_v25 = vadd.f32 %v2658_v5, %v1003_v4  ;;  %v1329_v12 = vpack.c.bf16 %v1259_v33, %v1170_v55 }
 0x1e7   : > { %1380 = vst.msk [vmem:[%s2589_s24 + $0xb8] sm:$0xff] %vm2591_vm1, %v1345_v17  ;;  %v1039_v44 = vadd.f32 %v2658_v5, %v1004_v22 }
 0x1e8   : > { %1364 = vst.msk [vmem:[%s2589_s24 + $0x38] sm:$0xff] %vm2591_vm1, %v1329_v12 }
 0x1e9   : > { %v1063_v59 = vpack.c.bf16 %v1039_v44, %v1038_v25 }
 0x1eb   : > { %v1213_v46 = vpop.f32.mrf.mxu2  ;;  %1514 = vmatmul.msk.bf16.gmra.mxu0 %vm274_vm0, %v1063_v59  ;;  %1530 = vmatmul.msk.bf16.gmra.mxu1 %vm274_vm0, %v1063_v59 }
 0x1ec   : > { %v1302_v57 = vpop.f32.mrf.mxu3 }
 0x1ed   : > { %v1346_v23 = vpack.c.bf16 %v1302_v57, %v1213_v46  ;;  %v1173_v35 = vpop.f32.mrf.mxu0  ;;  %v1262_v63 = vpop.f32.mrf.mxu1 }
 0x1ee   : > { %v1330_v5 = vpack.c.bf16 %v1262_v63, %v1173_v35 }
 0x1ef   : > { %1381 = vst.msk [vmem:[%s2589_s24 + $0xc0] sm:$0xff] %vm2591_vm1, %v1346_v23 }
 0x1f0   : > { %1365 = vst.msk [vmem:[%s2589_s24 + $0x40] sm:$0xff] %vm2591_vm1, %v1330_v5 }
 0x1f3   : > { %v1215_v14 = vpop.f32.mrf.mxu2 }
 0x1f4   : > { %v1304_v28 = vpop.f32.mrf.mxu3 }
 0x1f5   : > { %v1347_v32 = vpack.c.bf16 %v1304_v28, %v1215_v14  ;;  %v1175_v10 = vpop.f32.mrf.mxu0  ;;  %v1264_v50 = vpop.f32.mrf.mxu1 }
 0x1f6   : > { %v1331_v60 = vpack.c.bf16 %v1264_v50, %v1175_v10 }
 0x1f7   : > { %1382 = vst.msk [vmem:[%s2589_s24 + $0xc8] sm:$0xff] %vm2591_vm1, %v1347_v32 }
 0x1f8   : > { %1366 = vst.msk [vmem:[%s2589_s24 + $0x48] sm:$0xff] %vm2591_vm1, %v1331_v60 }
 0x1fb   : > { %v1218_v3 = vpop.f32.mrf.mxu2 }
 0x1fc   : > { %v1307_v6 = vpop.f32.mrf.mxu3 }
 0x1fd   : > { %v1348_v15 = vpack.c.bf16 %v1307_v6, %v1218_v3 }
 0x1ff   : > { %1383 = vst.msk [vmem:[%s2589_s24 + $0xd0] sm:$0xff] %vm2591_vm1, %v1348_v15 }
 0x203   : > { %v1220_v45 = vpop.f32.mrf.mxu2 }
 0x204   : > { %v1309_v30 = vpop.f32.mrf.mxu3 }
 0x205   : > { %v1349_v16 = vpack.c.bf16 %v1309_v30, %v1220_v45 }
 0x207   : > { %1384 = vst.msk [vmem:[%s2589_s24 + $0xd8] sm:$0xff] %vm2591_vm1, %v1349_v16 }
 0x22e   : > { %v1178_v52 = vpop.f32.mrf.mxu0  ;;  %v1267_v37 = vpop.f32.mrf.mxu1 }
 0x22f   : > { %v1332_v19 = vpack.c.bf16 %v1267_v37, %v1178_v52 }
 0x231   : > { %1367 = vst.msk [vmem:[%s2589_s24 + $0x50] sm:$0xff] %vm2591_vm1, %v1332_v19 }
 0x236   : > { %v1180_v47 = vpop.f32.mrf.mxu0  ;;  %v1269_v48 = vpop.f32.mrf.mxu1 }
 0x237   : > { %v1333_v41 = vpack.c.bf16 %v1269_v48, %v1180_v47 }
 0x239   : > { %1368 = vst.msk [vmem:[%s2589_s24 + $0x58] sm:$0xff] %vm2591_vm1, %v1333_v41 }
 0x24f   : > { %v1223_v21 = vpop.f32.mrf.mxu2  ;;  %v1312_v24 = vpop.f32.mrf.mxu3 }
 0x250   : > { %v1350_v27 = vpack.c.bf16 %v1312_v24, %v1223_v21 }
 0x251   : > { %v1183_v49 = vpop.f32.mrf.mxu0  ;;  %v1272_v40 = vpop.f32.mrf.mxu1 }
 0x252   : > { %1385 = vst.msk [vmem:[%s2589_s24 + $0xe0] sm:$0xff] %vm2591_vm1, %v1350_v27  ;;  %v1334_v42 = vpack.c.bf16 %v1272_v40, %v1183_v49 }
 0x254   : > { %1369 = vst.msk [vmem:[%s2589_s24 + $0x60] sm:$0xff] %vm2591_vm1, %v1334_v42 }
 0x257   : > { %v1225_v1 = vpop.f32.mrf.mxu2  ;;  %v1314_v7 = vpop.f32.mrf.mxu3 }
 0x258   : > { %v1351_v13 = vpack.c.bf16 %v1314_v7, %v1225_v1 }
 0x259   : > { %v1185_v38 = vpop.f32.mrf.mxu0  ;;  %v1274_v11 = vpop.f32.mrf.mxu1 }
 0x25a   : > { %1386 = vst.msk [vmem:[%s2589_s24 + $0xe8] sm:$0xff] %vm2591_vm1, %v1351_v13  ;;  %v1335_v2 = vpack.c.bf16 %v1274_v11, %v1185_v38 }
 0x25c   : > { %1370 = vst.msk [vmem:[%s2589_s24 + $0x68] sm:$0xff] %vm2591_vm1, %v1335_v2 }
 0x266   : > { %v1228_v61 = vpop.f32.mrf.mxu2  ;;  %v1317_v58 = vpop.f32.mrf.mxu3 }
 0x267   : > { %v1352_v9 = vpack.c.bf16 %v1317_v58, %v1228_v61 }
 0x268   : > { %v1188_v18 = vpop.f32.mrf.mxu0  ;;  %v1277_v31 = vpop.f32.mrf.mxu1 }
 0x269   : > { %1387 = vst.msk [vmem:[%s2589_s24 + $0xf0] sm:$0xff] %vm2591_vm1, %v1352_v9  ;;  %v1336_v54 = vpack.c.bf16 %v1277_v31, %v1188_v18 }
 0x26b   : > { %1371 = vst.msk [vmem:[%s2589_s24 + $0x70] sm:$0xff] %vm2591_vm1, %v1336_v54 }
 0x26e   : > { %v1230_v29 = vpop.f32.mrf.mxu2  ;;  %v1319_v26 = vpop.f32.mrf.mxu3 }
 0x26f   : > { %v1353_v8 = vpack.c.bf16 %v1319_v26, %v1230_v29 }
 0x270   : > { %v1190_v0 = vpop.f32.mrf.mxu0  ;;  %v1279_v20 = vpop.f32.mrf.mxu1 }
 0x271   : > { %1388 = vst.msk [vmem:[%s2589_s24 + $0xf8] sm:$0xff] %vm2591_vm1, %v1353_v8  ;;  %v1337_v34 = vpack.c.bf16 %v1279_v20, %v1190_v0 }
 0x273   : > { %1372 = vst.msk [vmem:[%s2589_s24 + $0x78] sm:$0xff] %vm2591_vm1, %v1337_v34 }
 0x274 PF: > { %s14_s17 = sadd.s32 1, %s1668_s17   ;;  %s2811_s15 = smov %s1664_s16 }
 0x275   : > { %p11_p5 = scmp.ge.s32.totalorder %s14_s17, 4   ;;  %s2812_s16 = smov %s2814_s18 }
 0x277   :  { %13 = sbr.rel (!%p11_p5) target bundleno = 2 (0x2), region = 66 }

</bundles_post_ra>
